<compile_context>
chip_gen: v7x
topology: tpu7x:2x2x1
jax: 0.10.0
libtpu: 0.0.40
codegen_flags: <defaults>
</compile_context>

<pallas_src>
import jax
import jax.numpy as jnp
import numpy as np
from jax.experimental import pallas as pl
from jax.experimental.pallas import tpu as pltpu


def attention_head_kernel(x_ref, w_ref, bw_ref, v_ref, bv_ref, out_ref,
                          m_sc, l_sc, acc_sc):
    """One (batch_tile, seq_tile) block of the tanh-attention pooling head.

    grid = (B // batch_tile, S // seq_tile); axis 1 (sequence) is a reduction
    handled with an online softmax, so a single pass over hidden_states gives
    the exact softmax-weighted sum over the full sequence.
    """
    k = pl.program_id(1)

    @pl.when(k == 0)
    def _():
        m_sc[...] = jnp.full_like(m_sc, -jnp.inf)
        l_sc[...] = jnp.zeros_like(l_sc)
        acc_sc[...] = jnp.zeros_like(acc_sc)

    x = x_ref[...]                                    # (bt, st, C), native dtype
    bt, st, c = x.shape
    xf = x.astype(jnp.float32)

    # att = tanh(x @ W + b_W)  -> (bt*st, H) on the MXU with f32 accumulation.
    x2 = x.reshape(bt * st, c)
    att = jnp.tanh(
        jnp.dot(x2, w_ref[...], preferred_element_type=jnp.float32)
        + bw_ref[...])                                # (bt*st, H)
    att3 = att.reshape(bt, st, att.shape[-1])         # (bt, st, H)

    # score = att @ V + b_V  -> (bt, st); b_V (SMEM scalar) is a no-op under
    # softmax but kept for fidelity with the PyTorch module.
    score = jnp.sum(att3 * v_ref[...], axis=-1) + bv_ref[0, 0]

    # --- online softmax over the sequence axis ---
    m_prev = m_sc[...]                                # (bt, 1)
    m_new = jnp.maximum(m_prev, jnp.max(score, axis=1, keepdims=True))
    alpha = jnp.exp(m_prev - m_new)                   # (bt, 1)
    p = jnp.exp(score - m_new)                        # (bt, st)

    l_sc[...] = alpha * l_sc[...] + jnp.sum(p, axis=1, keepdims=True)
    acc_sc[...] = alpha * acc_sc[...] + jnp.sum(p[:, :, None] * xf, axis=1)
    m_sc[...] = m_new

    @pl.when(k == pl.num_programs(1) - 1)
    def _():
        out_ref[...] = (acc_sc[...] * (1.0 / l_sc[...])).astype(out_ref.dtype)


def attention_head_forward(hidden_states, w, b_w, v, b_v, *,
                           seq_tile=256, batch_tile=None):
    """hidden_states: (B, S, cat_size);  w: (cat_size, hidden) == W.weight.T;
    b_w: (hidden,);  v: (hidden,) == V.weight[0];  b_v: scalar.
    Returns (B, cat_size)."""
    B, S, C = hidden_states.shape
    H = w.shape[1]

    if batch_tile is None:
        batch_tile = 8 if (B % 8 == 0 and B > 8) else B
    seq_tile = min(seq_tile, S)
    assert B % batch_tile == 0 and S % seq_tile == 0
    # (8, 128)-tiling rule on the last two block dims.
    assert seq_tile == S or seq_tile % 8 == 0
    assert batch_tile == B or batch_tile % 8 == 0

    dt_bytes = jnp.dtype(hidden_states.dtype).itemsize
    # Double-buffered x block + f32 intermediates + weights + accumulators,
    # clamped to 48 MiB so the same tiling is safe on v7x (64 MiB VMEM) and
    # explicitly above v5e's 16 MiB default scoped limit when needed.
    vmem_needed = (2 * batch_tile * seq_tile * C * dt_bytes        # x pipeline
                   + 2 * batch_tile * seq_tile * H * 4             # att scratch
                   + (C * H + 2 * H) * 4                           # weights
                   + batch_tile * (2 * C + 2) * 4                  # acc/out/m/l
                   + (4 << 20))                                    # headroom
    vmem_limit = int(min(max(vmem_needed, 16 << 20), 48 << 20))

    grid = (B // batch_tile, S // seq_tile)
    call = pl.pallas_call(
        attention_head_kernel,
        out_shape=jax.ShapeDtypeStruct((B, C), hidden_states.dtype),
        grid_spec=pltpu.PrefetchScalarGridSpec(
            num_scalar_prefetch=0,
            grid=grid,
            in_specs=[
                pl.BlockSpec((batch_tile, seq_tile, C), lambda b, k: (b, k, 0)),
                pl.BlockSpec((C, H), lambda b, k: (0, 0)),
                pl.BlockSpec((1, H), lambda b, k: (0, 0)),
                pl.BlockSpec((1, H), lambda b, k: (0, 0)),
                pl.BlockSpec(memory_space=pltpu.MemorySpace.SMEM),
            ],
            out_specs=pl.BlockSpec((batch_tile, C), lambda b, k: (b, 0)),
            scratch_shapes=[
                pltpu.VMEM((batch_tile, 1), jnp.float32),   # running max
                pltpu.VMEM((batch_tile, 1), jnp.float32),   # running denom
                pltpu.VMEM((batch_tile, C), jnp.float32),   # weighted-sum acc
            ],
        ),
        compiler_params=pltpu.CompilerParams(
            dimension_semantics=("parallel", "arbitrary"),
            vmem_limit_bytes=vmem_limit,
        ),
    )
    return call(hidden_states,
                w,
                b_w.reshape(1, H).astype(jnp.float32),
                v.reshape(1, H).astype(jnp.float32),
                jnp.asarray(b_v, jnp.float32).reshape(1, 1))


def reference_forward(hidden_states, w, b_w, v, b_v):
    """Pure-JAX mirror of the PyTorch AttentionHead.forward."""
    att = jnp.tanh(jnp.einsum("bsc,ch->bsh", hidden_states, w) + b_w)
    score = jnp.einsum("bsh,h->bs", att, v) + b_v          # (B, S)
    att_w = jax.nn.softmax(score, axis=1)[:, :, None]      # softmax over seq
    return jnp.sum(att_w * hidden_states, axis=1)          # (B, cat_size)


if __name__ == "__main__":
    # Small stand-ins: batch=16, seq=128, cat_size=128, hidden_size=128.
    B, S, C, H = 16, 128, 128, 128
    key = jax.random.PRNGKey(0)
    kx, kw, kbw, kv = jax.random.split(key, 4)

    x = jax.random.normal(kx, (B, S, C), jnp.float32)            # hidden_states
    w = jax.random.normal(kw, (C, H), jnp.float32) / np.sqrt(C)  # W.weight.T
    b_w = jax.random.normal(kbw, (H,), jnp.float32) * 0.02       # W.bias
    v = jax.random.normal(kv, (H,), jnp.float32) / np.sqrt(H)    # V.weight[0]
    b_v = 0.05                                                   # V.bias

    # seq_tile=64 < S and batch_tile=8 < B exercise both the online-softmax
    # accumulation across sequence steps and the parallel batch axis.
    out = jax.block_until_ready(
        attention_head_forward(x, w, b_w, v, b_v, seq_tile=64, batch_tile=8))

    ref = reference_forward(x, w, b_w, v, jnp.float32(b_v))
    np.testing.assert_allclose(np.asarray(out), np.asarray(ref),
                               rtol=2e-2, atol=2e-2)
    print("KERNEL_OK")
</pallas_src>

<mosaic_0001>
module attributes {stable_mosaic.version = 11 : i64} {
  func.func @attention_head_kernel(%arg0: i32, %arg1: i32, %arg2: memref<8x64x128xf32, #tpu.memory_space<vmem>>, %arg3: memref<128x128xf32, #tpu.memory_space<vmem>>, %arg4: memref<1x128xf32, #tpu.memory_space<vmem>>, %arg5: memref<1x128xf32, #tpu.memory_space<vmem>>, %arg6: memref<1x1xf32, #tpu.memory_space<smem>>, %arg7: memref<8x128xf32, #tpu.memory_space<vmem>>, %arg8: memref<8x1xf32, #tpu.memory_space<vmem>>, %arg9: memref<8x1xf32, #tpu.memory_space<vmem>>, %arg10: memref<8x128xf32, #tpu.memory_space<vmem>>) attributes {dimension_semantics = [#tpu.dimension_semantics<parallel>, #tpu.dimension_semantics<arbitrary>], iteration_bounds = array<i64: 2, 2>, scalar_prefetch = 0 : i64, scratch_operands = 3 : i64, tpu.core_type = #tpu.core_type<tc>, window_params = [{transform_indices = @transform_0, window_bounds = array<i64: 8, 64, 128>}, {pipeline_mode = #tpu.pipeline_mode<synchronous>, transform_indices = @transform_1, window_bounds = array<i64: 128, 128>}, {pipeline_mode = #tpu.pipeline_mode<synchronous>, transform_indices = @transform_2, window_bounds = array<i64: 1, 128>}, {pipeline_mode = #tpu.pipeline_mode<synchronous>, transform_indices = @transform_3, window_bounds = array<i64: 1, 128>}, {transform_indices = @transform_4, window_bounds = array<i64: 1, 1>}, {transform_indices = @transform_5, window_bounds = array<i64: 8, 128>}]} {
    %c0_i32 = arith.constant 0 : i32
    %0 = arith.cmpi eq, %arg1, %c0_i32 : i32
    %1 = arith.extui %0 : i1 to i32
    %c0_i32_0 = arith.constant 0 : i32
    %2 = arith.cmpi ne, %1, %c0_i32_0 : i32
    scf.if %2 {
      %cst_28 = arith.constant 0xFF800000 : f32
      %48 = vector.broadcast %cst_28 : f32 to vector<8x1xf32>
      %c0_29 = arith.constant 0 : index
      %c0_30 = arith.constant 0 : index
      %49 = vector.load %arg8[%c0_29, %c0_30] : memref<8x1xf32, #tpu.memory_space<vmem>>, vector<8x1xf32>
      tpu.vector_store %arg8[%c0_29, %c0_30], %48 {strides = array<i32>} : memref<8x1xf32, #tpu.memory_space<vmem>>, vector<8x1xf32>,
      %cst_31 = arith.constant 0.000000e+00 : f32
      %50 = vector.broadcast %cst_31 : f32 to vector<8x1xf32>
      %c0_32 = arith.constant 0 : index
      %c0_33 = arith.constant 0 : index
      %51 = vector.load %arg9[%c0_32, %c0_33] : memref<8x1xf32, #tpu.memory_space<vmem>>, vector<8x1xf32>
      tpu.vector_store %arg9[%c0_32, %c0_33], %50 {strides = array<i32>} : memref<8x1xf32, #tpu.memory_space<vmem>>, vector<8x1xf32>,
      %cst_34 = arith.constant 0.000000e+00 : f32
      %52 = vector.broadcast %cst_34 : f32 to vector<8x128xf32>
      %c0_35 = arith.constant 0 : index
      %c0_36 = arith.constant 0 : index
      %53 = vector.load %arg10[%c0_35, %c0_36] : memref<8x128xf32, #tpu.memory_space<vmem>>, vector<8x128xf32>
      tpu.vector_store %arg10[%c0_35, %c0_36], %52 {strides = array<i32>} : memref<8x128xf32, #tpu.memory_space<vmem>>, vector<8x128xf32>,
    } else {
    }
    %c0 = arith.constant 0 : index
    %c0_1 = arith.constant 0 : index
    %c0_2 = arith.constant 0 : index
    %3 = vector.load %arg2[%c0, %c0_1, %c0_2] : memref<8x64x128xf32, #tpu.memory_space<vmem>>, vector<8x64x128xf32>
    %4 = vector.shape_cast %3 : vector<8x64x128xf32> to vector<512x128xf32>
    %c0_3 = arith.constant 0 : index
    %c0_4 = arith.constant 0 : index
    %5 = vector.load %arg3[%c0_3, %c0_4] : memref<128x128xf32, #tpu.memory_space<vmem>>, vector<128x128xf32>
    %cst = arith.constant dense<0.000000e+00> : vector<512x128xf32>
    %6 = tpu.matmul %4, %5, %cst {dimension_numbers = #tpu.dot_dimension_numbers<[1], [0], [0], [1], [0, 0, 1, 1], [], []>} : vector<512x128xf32>, vector<128x128xf32>, vector<512x128xf32> -> vector<512x128xf32>
    %c0_5 = arith.constant 0 : index
    %c0_6 = arith.constant 0 : index
    %7 = vector.load %arg4[%c0_5, %c0_6] : memref<1x128xf32, #tpu.memory_space<vmem>>, vector<1x128xf32>
    %8 = vector.broadcast %7 : vector<1x128xf32> to vector<512x128xf32>
    %9 = arith.addf %6, %8 : vector<512x128xf32>
    %10 = math.tanh %9 : vector<512x128xf32>
    %11 = vector.shape_cast %10 : vector<512x128xf32> to vector<8x64x128xf32>
    %c0_7 = arith.constant 0 : index
    %c0_8 = arith.constant 0 : index
    %12 = vector.load %arg5[%c0_7, %c0_8] : memref<1x128xf32, #tpu.memory_space<vmem>>, vector<1x128xf32>
    %13 = vector.shape_cast %12 : vector<1x128xf32> to vector<1x1x128xf32>
    %14 = vector.broadcast %13 : vector<1x1x128xf32> to vector<8x64x128xf32>
    %15 = arith.mulf %11, %14 : vector<8x64x128xf32>
    %cst_9 = arith.constant dense<0.000000e+00> : vector<8x64xf32>
    %16 = vector.multi_reduction <add>, %15, %cst_9 [2] : vector<8x64x128xf32> to vector<8x64xf32>
    %c0_10 = arith.constant 0 : index
    %c0_11 = arith.constant 0 : index
    %17 = memref.load %arg6[%c0_10, %c0_11] : memref<1x1xf32, #tpu.memory_space<smem>>
    %18 = vector.broadcast %17 : f32 to vector<8x64xf32>
    %19 = arith.addf %16, %18 : vector<8x64xf32>
    %c0_12 = arith.constant 0 : index
    %c0_13 = arith.constant 0 : index
    %20 = vector.load %arg8[%c0_12, %c0_13] : memref<8x1xf32, #tpu.memory_space<vmem>>, vector<8x1xf32>
    %cst_14 = arith.constant dense<0xFF800000> : vector<8xf32>
    %21 = vector.multi_reduction <maximumf>, %19, %cst_14 [1] : vector<8x64xf32> to vector<8xf32>
    %22 = vector.shape_cast %21 : vector<8xf32> to vector<8x1xf32>
    %23 = arith.maximumf %20, %22 : vector<8x1xf32>
    %24 = arith.subf %20, %23 : vector<8x1xf32>
    %25 = math.exp %24 : vector<8x1xf32>
    %26 = vector.broadcast %23 : vector<8x1xf32> to vector<8x64xf32>
    %27 = arith.subf %19, %26 : vector<8x64xf32>
    %28 = math.exp %27 : vector<8x64xf32>
    %c0_15 = arith.constant 0 : index
    %c0_16 = arith.constant 0 : index
    %29 = vector.load %arg9[%c0_15, %c0_16] : memref<8x1xf32, #tpu.memory_space<vmem>>, vector<8x1xf32>
    %30 = arith.mulf %25, %29 : vector<8x1xf32>
    %cst_17 = arith.constant dense<0.000000e+00> : vector<8xf32>
    %31 = vector.multi_reduction <add>, %28, %cst_17 [1] : vector<8x64xf32> to vector<8xf32>
    %32 = vector.shape_cast %31 : vector<8xf32> to vector<8x1xf32>
    %33 = arith.addf %30, %32 : vector<8x1xf32>
    %c0_18 = arith.constant 0 : index
    %c0_19 = arith.constant 0 : index
    %34 = vector.load %arg9[%c0_18, %c0_19] : memref<8x1xf32, #tpu.memory_space<vmem>>, vector<8x1xf32>
    tpu.vector_store %arg9[%c0_18, %c0_19], %33 {strides = array<i32>} : memref<8x1xf32, #tpu.memory_space<vmem>>, vector<8x1xf32>,
    %c0_20 = arith.constant 0 : index
    %c0_21 = arith.constant 0 : index
    %35 = vector.load %arg10[%c0_20, %c0_21] : memref<8x128xf32, #tpu.memory_space<vmem>>, vector<8x128xf32>
    %36 = vector.broadcast %25 : vector<8x1xf32> to vector<8x128xf32>
    %37 = arith.mulf %36, %35 : vector<8x128xf32>
    %38 = vector.shape_cast %28 : vector<8x64xf32> to vector<8x64x1xf32>
    %39 = vector.broadcast %38 : vector<8x64x1xf32> to vector<8x64x128xf32>
    %40 = arith.mulf %39, %3 : vector<8x64x128xf32>
    %cst_22 = arith.constant dense<0.000000e+00> : vector<8x128xf32>
    %41 = vector.multi_reduction <add>, %40, %cst_22 [1] : vector<8x64x128xf32> to vector<8x128xf32>
    %42 = arith.addf %37, %41 : vector<8x128xf32>
    %c0_23 = arith.constant 0 : index
    %c0_24 = arith.constant 0 : index
    %43 = vector.load %arg10[%c0_23, %c0_24] : memref<8x128xf32, #tpu.memory_space<vmem>>, vector<8x128xf32>
    tpu.vector_store %arg10[%c0_23, %c0_24], %42 {strides = array<i32>} : memref<8x128xf32, #tpu.memory_space<vmem>>, vector<8x128xf32>,
    %c0_25 = arith.constant 0 : index
    %c0_26 = arith.constant 0 : index
    %44 = vector.load %arg8[%c0_25, %c0_26] : memref<8x1xf32, #tpu.memory_space<vmem>>, vector<8x1xf32>
    tpu.vector_store %arg8[%c0_25, %c0_26], %23 {strides = array<i32>} : memref<8x1xf32, #tpu.memory_space<vmem>>, vector<8x1xf32>,
    %c1_i32 = arith.constant 1 : i32
    %45 = arith.cmpi eq, %arg1, %c1_i32 : i32
    %46 = arith.extui %45 : i1 to i32
    %c0_i32_27 = arith.constant 0 : i32
    %47 = arith.cmpi ne, %46, %c0_i32_27 : i32
    scf.if %47 {
      %c0_28 = arith.constant 0 : index
      %c0_29 = arith.constant 0 : index
      %48 = vector.load %arg10[%c0_28, %c0_29] : memref<8x128xf32, #tpu.memory_space<vmem>>, vector<8x128xf32>
      %c0_30 = arith.constant 0 : index
      %c0_31 = arith.constant 0 : index
      %49 = vector.load %arg9[%c0_30, %c0_31] : memref<8x1xf32, #tpu.memory_space<vmem>>, vector<8x1xf32>
      %cst_32 = arith.constant 1.000000e+00 : f32
      %50 = vector.broadcast %cst_32 : f32 to vector<8x1xf32>
      %51 = arith.divf %50, %49 : vector<8x1xf32>
      %52 = vector.broadcast %51 : vector<8x1xf32> to vector<8x128xf32>
      %53 = arith.mulf %48, %52 : vector<8x128xf32>
      %c0_33 = arith.constant 0 : index
      %c0_34 = arith.constant 0 : index
      %54 = vector.load %arg7[%c0_33, %c0_34] : memref<8x128xf32, #tpu.memory_space<vmem>>, vector<8x128xf32>
      tpu.vector_store %arg7[%c0_33, %c0_34], %53 {strides = array<i32>} : memref<8x128xf32, #tpu.memory_space<vmem>>, vector<8x128xf32>,
    } else {
    }
    return
  }
  func.func @transform_0(%arg0: i32, %arg1: i32) -> (i32, i32, i32) {
    %c0_i32 = arith.constant 0 : i32
    %c0_i32_0 = arith.constant 0 : i32
    return %arg0, %arg1, %c0_i32 : i32, i32, i32
  }
  func.func @transform_1(%arg0: i32, %arg1: i32) -> (i32, i32) {
    %c0_i32 = arith.constant 0 : i32
    %c0_i32_0 = arith.constant 0 : i32
    %c0_i32_1 = arith.constant 0 : i32
    return %c0_i32, %c0_i32_0 : i32, i32
  }
  func.func @transform_2(%arg0: i32, %arg1: i32) -> (i32, i32) {
    %c0_i32 = arith.constant 0 : i32
    %c0_i32_0 = arith.constant 0 : i32
    %c0_i32_1 = arith.constant 0 : i32
    return %c0_i32, %c0_i32_0 : i32, i32
  }
  func.func @transform_3(%arg0: i32, %arg1: i32) -> (i32, i32) {
    %c0_i32 = arith.constant 0 : i32
    %c0_i32_0 = arith.constant 0 : i32
    %c0_i32_1 = arith.constant 0 : i32
    return %c0_i32, %c0_i32_0 : i32, i32
  }
  func.func @transform_4(%arg0: i32, %arg1: i32) -> (i32, i32) {
    %c0_i32 = arith.constant 0 : i32
    %c0_i32_0 = arith.constant 0 : i32
    %c0_i32_1 = arith.constant 0 : i32
    return %c0_i32, %c0_i32_0 : i32, i32
  }
  func.func @transform_5(%arg0: i32, %arg1: i32) -> (i32, i32) {
    %c0_i32 = arith.constant 0 : i32
    %c0_i32_0 = arith.constant 0 : i32
    return %arg0, %c0_i32 : i32, i32
  }
}

</mosaic_0001>

<bundles_post_ra>
// kernel: tpu_custom_call.1
= control target key start
LH: loop header
LB: loop body
LE: loop exit
PB: predicated region body
PF: predicated region fallthrough
CT: control target
= control target key end

     0   :  { %s5304_s0 = inlined_call_operand.hbm [shape: f32[16,128,128], index: 0, kind: input, shape index: {}]   ;;  %s5305_s1 = inlined_call_operand.hbm [shape: f32[128,128], index: 1, kind: input, shape index: {}]   ;;  %s5306_s2 = inlined_call_operand.vmem [shape: f32[1,128], index: 2, kind: input, shape index: {}]   ;;  %s5307_s3 = inlined_call_operand.vmem [shape: f32[1,128], index: 3, kind: input, shape index: {}]   ;;  %s5308_s4 = inlined_call_operand.<no memory space> [shape: f32[1,1], index: 4, kind: input, shape index: {}]   ;;  %s5309_s5 = inlined_call_operand.hbm [shape: f32[16,128], index: 5, kind: output, shape index: {}]  }
   0x1   :  { %5356 = sst [smem:[#allocation57_spill]] %s5305_s1 }
   0x2   :  { %10 = sst [smem:[#allocation5]] %s5308_s4 }
   0x3   :  { %11 = vsyncpa [#allocation7], 0 }
   0x4   :  { %13 = vsyncpa [#allocation7 + $0x1], 0 }
   0x5   :  { %14 = vsyncpa [#allocation10], 0 }
   0x6   :  { %15 = vsyncpa [#allocation8], 0 }
   0x7   :  { %17 = vsyncpa [#allocation8 + $0x1], 0  ;;  %s3665_s20 = smov 0   ;;  %s3667_s21 = smov 0  }
   0x8   :  { %s3669_s22 = smov 0   ;;  %s3671_s23 = smov 0  }
   0x9   :  { %s3673_s24 = smov 0   ;;  %s3675_s25 = smov 0  }
   0xa   :  { %s3677_s26 = smov 0   ;;  %s3679_s4 = smov 0  }
   0xb   :  { %s3681_s27 = smov 0   ;;  %s3683_s28 = smov 0  }
   0xc   :  { %s3685_s29 = smov 0  }
   0xd LB: > { %5357 = sst [smem:[#allocation18_spill]] %s3585_s22  ;;  %s2729_s30 = sadd.s32 4294967295, %s3617_s29   ;;  %s3617_s29 = sphi %s3685_s29, %s23_s29   ;;  %s3613_s28 = sphi %s3683_s28, %s5450_s28   ;;  %s3609_s27 = sphi %s3681_s27, %s5449_s27   ;;  %s3605_s4 = sphi %s3679_s4, %s5448_s4   ;;  %s3601_s26 = sphi %s3677_s26, %s5447_s26   ;;  %s3597_s25 = sphi %s3675_s25, %s5446_s25   ;;  %s3593_s24 = sphi %s3673_s24, %s5454_s24   ;;  %s3589_s23 = sphi %s3671_s23, %s5453_s23   ;;  %s3585_s22 = sphi %s3669_s22, %s5444_s22   ;;  %s3581_s21 = sphi %s3667_s21, %s5452_s21   ;;  %s3577_s20 = sphi %s3665_s20, %s5451_s20  }
   0xe   : > { %5358 = sst [smem:[#allocation19_spill]] %s3597_s25  ;;  %s2730_s6 = sadd.s32 4294967294, %s3617_s29  }
   0xf   : > { %5359 = sst [smem:[#allocation20_spill]] %s3609_s27  ;;  %s32_s7 = sadd.s32 1, %s3609_s27 }
  0x10   : > { %5360 = sst [smem:[#allocation21_spill]] %s3613_s28  ;;  %s35_s8 = sadd.s32 1, %s3613_s28 }
  0x11   : > { %p33_p0 = scmp.ge.s32.totalorder %s32_s7, 2  ;;  %s44_s9 = sadd.s32 1, %s3597_s25 }
  0x12   : > { %p51_p1 = scmp.ne.s32.totalorder %s3597_s25, %s3593_s24  ;;  %p52_p2 = scmp.eq.s32.totalorder %s3617_s29, 0 }
  0x13   : > { %s5456_s7 = smov (%p33_p0, %s32_s7), 0  ;;  %s5458_s8 = smov (!%p33_p0, %s35_s8), %s3613_s28 }
  0x14   : > { %5361 = sst [smem:[#allocation22_spill]] %s5456_s7  ;;  %s40_s10 = ssub.s32 %s3609_s27, %s5456_s7 }
  0x15   : > { %p3731_p3 = por %p52_p2, %p51_p1  ;;  %p37_p4 = scmp.ge.s32.totalorder %s5458_s8, 2 }
  0x16   : > { %p57_p5 = scmp.ne.s32.totalorder %s3593_s24, %s3589_s23  ;;  %p3736_p6 = scmp.eq.s32.totalorder %s2729_s30, 0 }
  0x17   : > { %s5362_s11 = scalar_select %p3731_p3, 1, 0 }
  0x18   : > { %s5363_s12 = scalar_select %p3736_p6, 1, 0 }
  0x19   : > { %s154_s13 = sadd.s32 1, %s3585_s22  ;;  %s5460_s8 = smov (%p37_p4, %s5458_s8), 0 }
  0x1a   : > { %5364 = sst [smem:[#allocation23_spill]] %s5460_s8  ;;  %p3745_p7 = por %p3736_p6, %p57_p5 }
  0x1b   : > { %p164_p8 = scmp.ne.s32.totalorder %s3585_s22, %s3581_s21  ;;  %s39_s15 = ssub.s32 %s3613_s28, %s5460_s8 }
  0x1c   : > { %s5365_s14 = scalar_select %p3745_p7, 1, 0 }
  0x1d   : > { %p165_p9 = scmp.eq.s32.totalorder %s2729_s30, 3  ;;  %s41_s16 = sor.u32 %s40_s10, %s39_s15 }
  0x1e   : > { %p152_p10 = scmp.eq.s32.totalorder %s39_s15, 0  ;;  %p42_p11 = scmp.eq.s32.totalorder %s41_s16, 0 }
  0x1f   : > { %p3753_p12 = por %p165_p9, %p164_p8  ;;  %p170_p13 = scmp.ne.s32.totalorder %s3581_s21, %s3577_s20 }
  0x20   : > { %s3758_s18 = scalar_select %p152_p10, %s3585_s22, %s154_s13  }
  0x21   : > { %s5366_s17 = scalar_select %p3753_p12, 1, 0 }
  0x22   : > { %5367 = sst [smem:[#allocation24_spill]] %s3758_s18  ;;  %p171_p0 = scmp.eq.s32.totalorder %s2730_s6, 3 }
  0x23   : > { %s3761_s19 = scalar_select %p42_p11, %s3597_s25, %s44_s9  }
  0x24   : > { %p2731_p1 = scmp.ge.s32.totalorder %s3617_s29, 1  ;;  %p178_p2 = scmp.lt.s32.totalorder %s3617_s29, 5 }
  0x25   : > { %5368 = sst [smem:[#allocation25_spill]] %s3761_s19  ;;  %p3767_p4 = por %p171_p0, %p170_p13 }
  0x26   : > { %p3771_p5 = pnand %p2731_p1, %p178_p2  ;;  %s3619_s10 = smov [#allocation9]  }
  0x27   : > { %s5369_s23 = scalar_select %p3767_p4, 1, 0 }
  0x28   : > { %s5370_s30 = scalar_select %p3771_p5, 1, 0 }
  0x29   : > { %s190_s15 = sshll.u32 %s3619_s10, 4  ;;  %p3025_p8 = pneg %p3771_p5  ;;  %s191_s15 = int_to_ptr.vmem [resolvable:$true] %s190_s15 }
  0x2a   : > { %s5372_s1 = sld [smem:[#allocation57_spill]] }
  0x2b   : > { %p3779_p9 = pnand %p3025_p8, %p3736_p6 }
  0x2d   : > { %p3465_p11 = pneg %p3779_p9 }
  0x30   : > { %s3463_s16 = scalar_lea.hbm %s5372_s1, 2048 }
  0x31   : > { %p3464_p10 = scmp.ne.s32.totalorder %s5372_s1, %s3463_s16  ;;  %p3470_p1 = scmp.lt.u32.totalorder %s3463_s16, %s5372_s1 }
  0x33   : > { %p3466_p13 = pnand %p3465_p11, %p3464_p10 }
  0x35   : > { %p3467_p0 = pneg %p3466_p13 }
  0x37   : > { %p3472_p2 = pnand %p3470_p1, %p3467_p0 }
  0x39   : > { %3475 = shalt.err (!%p3472_p2)
}
  0x3a   : > { %s3476_s18 = scalar_lea.vmem %s191_s15, 2048  ;;  %p3484_p6 = scmp.lt.s32.totalorder %s191_s15, %s191_s15 }
  0x3b   : > { %p3477_p8 = scmp.ne.s32.totalorder %s191_s15, %s3476_s18  ;;  %p3485_p7 = scmp.lt.s32.totalorder %s3476_s18, %s3476_s18 }
  0x3d   : > { %p3479_p4 = pnand %p3477_p8, %p3465_p11  ;;  %p3486_p5 = por %p3485_p7, %p3484_p6 }
  0x3f   : > { %p3480_p12 = pneg %p3479_p4 }
  0x41   : > { %p3487_p3 = pnand %p3486_p5, %p3480_p12 }
  0x43   : > { %3490 = shalt.err (!%p3487_p3)
}
  0x44   : > { %s3620_s7 = smov 128   ;;  %s3621_s8 = smov 8  }
  0x45   : > { %3028 = dma.hbm_to_vmem [thread:$0]  (!%p3779_p9), %s5372_s1, 2048, %s191_s15, [#allocation10], %s3620_s7, %s3620_s7, %s3621_s8  }
  0x46   : > { %p2733_p10 = scmp.ge.s32.totalorder %s3617_s29, 4 }
  0x48   : > { %209 = sbr.rel (%p2733_p10) target bundleno = 96 (0x60), region = 32 }
  0x4f   : > { %s213_s18 = sand.u32 1, %s3597_s25   ;;  %s2736_s19 = sshll.u32 %s3609_s27, 3 }
  0x50   : > { %s2734_s16 = sshll.u32 %s213_s18, 9  ;;  %s2753_s10 = sshll.u32 %s3613_s28, 7 }
  0x51   : > { %s224_s9 = sadd.s32 %s2753_s10, %s2736_s19  ;;  %s217_s22 = scalar_lea.vmem [#allocation6], %s2734_s16 }
  0x52   : > { %s239_s15 = sshll.u32 %s217_s22, 4  ;;  %s2738_s7 = sshll.u32 %s224_s9, 7  ;;  %s240_s15 = int_to_ptr.vmem [resolvable:$true] %s239_s15 }
  0x53   : > { %p5373_p3 = scmp.ne.s32.totalorder %s5362_s11, 0  ;;  %s3622_s6 = smov 2048  }
  0x54   : > { %s3623_s1 = smov 1024   ;;  %s3624_s27 = smov 8  }
  0x55   : > { %s3012_s8 = scalar_select %p5373_p3, [#allocation0], [#allocation14] }
  0x56   : > { %3013 = sst [smem:[#allocation13]] (%p5373_p3), %s3622_s6  ;;  %s3625_s19 = smov 128  }
  0x57   : > { %s231_s13 = sld [smem:[%s3012_s8]]   ;;  %s226_s10 = scalar_lea.hbm %s5304_s0, %s2738_s7 }
  0x58   : > { %3014 = sst [smem:[#allocation13 + $0x1]] (%p5373_p3), %s3623_s1  ;;  %s214_s6 = scalar_lea.sflag [#allocation7], %s213_s18 }
  0x59   : > { %3015 = sst [smem:[#allocation13 + $0x2]] (%p5373_p3), %s3624_s27  ;;  %s3626_s28 = smov [#allocation12]  }
  0x5a   : > { %3016 = sst [smem:[#allocation13 + $0x3]] (%p5373_p3), %s3625_s19 }
  0x5b   : > { %3017 = sst [smem:[#allocation13 + $0x4]] (%p5373_p3), %s3625_s19 }
  0x5c   : > { %3018 = sst [smem:[#allocation13 + $0x5]] (%p5373_p3), %s3624_s27 }
  0x5d   : > { %s2739_s9 = sshll.u32 %s231_s13, 26 }
  0x5e   : > { %s2740_s8 = sadd.s32 134217728, %s2739_s9 }
  0x5f   : > { %3019 = dma.general (%p5373_p3), %s226_s10, 8192, %s240_s15, %s214_s6, %s3626_s28, [#allocation13], %s2740_s8, 0  }
  0x60 PF: > { %p5374_p6 = scmp.ne.s32.totalorder %s5370_s30, 0 }
  0x62   : > { %264 = sbr.rel (%p5374_p6) target bundleno = 1535 (0x5ff), region = 40 }
  0x69   : > { %s266_s1 = sand.u32 1, %s3593_s24   ;;  %p5375_p7 = scmp.ne.s32.totalorder %s5365_s14, 0 }
  0x6a   : > { %s2742_s25 = sshll.u32 %s266_s1, 9  ;;  %s267_s16 = scalar_lea.sflag [#allocation7], %s266_s1 }
  0x6b   : > { %s3825_s7 = scalar_lea.vmem [#allocation6], %s2742_s25 }
  0x6c   : > { %3564 = dma.done.wait (%p5375_p7), %s267_s16, 8192  }
  0x6d   : > { %3566 = vsyncadd (%p5375_p7), %s267_s16, 4294959104  ;;  %p5376_p12 = scmp.ne.s32.totalorder %s5363_s12, 0 }
  0x6f   : > { %3568 = dma.done.wait (%p5376_p12), [#allocation10], 2048  }
  0x70   : > { %3570 = vsyncadd (%p5376_p12), [#allocation10], 4294965248  ;;  %s298_s27 = sand.u32 1, %s3581_s21   ;;  %p2745_p4 = scmp.ne.s32.totalorder %s3601_s26, 0 }
  0x71   : > { %s3838_s28 = sshll.u32 %s298_s27, 3  ;;  %vm307_vm0 = vcmask (!%p2745_p4), 7168   ;;  %v3627_v0 = vmov (!%p2745_p4), -inf   ;;  %v3628_v1 = vmov (!%p2745_p4), 0.0  }
  0x72   : > { %s300_s25 = scalar_lea.vmem [#allocation11], %s3838_s28  ;;  %306 = sbr.rel (%p2745_p4) target bundleno = 121 (0x79), region = 52  ;;  %308 = vst.msk [vmem:[#allocation2] sm:$0xff] (!%p2745_p4), %vm307_vm0, %v3627_v0  ;;  %309 = vst.msk [vmem:[#allocation3] sm:$0xff] (!%p2745_p4), %vm307_vm0, %v3628_v1 }
  0x73   : > { %310 = vst [vmem:[#allocation4] sm:$0xff] (!%p2745_p4), %v3628_v1 }
  0x79 PF: > { %v375_v2 = vld [vmem:[#allocation9] sm:$0xff]  ;;  %v376_v3 = vld [vmem:[#allocation9 + $0x8] sm:$0xff]  ;;  %v377_v4 = vld [vmem:[#allocation9 + $0x10] sm:$0xff]  ;;  %s1046_s18 = sld [smem:[#allocation5]]  ;;  %vm1188_vm1 = vcmask 130112   ;;  %vm1195_vm2 = vcmask 195712  }
  0x7a   : > { %v2962_v5 = vpack.c.bf16 %v376_v3, %v375_v2  ;;  %v378_v6 = vld [vmem:[#allocation9 + $0x18] sm:$0xff]  ;;  %v379_v8 = vld [vmem:[#allocation9 + $0x20] sm:$0xff]  ;;  %v380_v9 = vld [vmem:[#allocation9 + $0x28] sm:$0xff]  ;;  %vm1202_vm3 = vcmask 261312   ;;  %vm1209_vm4 = vcmask 326912   ;;  %vm1216_vm5 = vcmask 392512  }
  0x7b   : > { %v2966_v7 = vpack.c.bf16 %v378_v6, %v377_v4  ;;  %v2970_v10 = vpack.c.bf16 %v380_v9, %v379_v8  ;;  %v311_v11 = vld [vmem:[%s3825_s7] sm:$0xff]  ;;  %v381_v13 = vld [vmem:[#allocation9 + $0x30] sm:$0xff]  ;;  %v382_v14 = vld [vmem:[#allocation9 + $0x38] sm:$0xff]  ;;  %vm1223_vm6 = vcmask 458112   ;;  %vm1230_vm7 = vcmask 523712   ;;  %p2748_p5 = scmp.ne.s32.totalorder %s3601_s26, 1 }
  0x7c   : > { %2963 = vmatprep.subr.bf16.mxu0 %v2962_v5  ;;  %2994 = vmatprep.subr.bf16.mxu1 %v2962_v5  ;;  %v343_v12 = vld [vmem:[%s3825_s7 + $0x100] sm:$0xff]  ;;  %v2974_v15 = vpack.c.bf16 %v382_v14, %v381_v13  ;;  %v384_v17 = vld [vmem:[#allocation9 + $0x48] sm:$0xff]  ;;  %v385_v19 = vld [vmem:[#allocation9 + $0x50] sm:$0xff]  ;;  %vm1505_vm8 = vcmask 1041409   ;;  %vm1507_vm9 = vcmask 1042434   ;;  %vm1509_vm10 = vcmask 1043459  }
  0x7d   : > { %2965 = vmatpush3.bf16.msra.mxu0 %v2962_v5  ;;  %3002 = vmatpush3.bf16.msra.mxu1 %v2962_v5  ;;  %v383_v16 = vld [vmem:[#allocation9 + $0x40] sm:$0xff]  ;;  %v386_v20 = vld [vmem:[#allocation9 + $0x58] sm:$0xff]  ;;  %v388_v23 = vld [vmem:[#allocation9 + $0x68] sm:$0xff]  ;;  %vm1511_vm11 = vcmask 1044484   ;;  %vm1513_vm12 = vcmask 1045509   ;;  %vm1515_vm13 = vcmask 1046534  }
  0x7e   : > { %2967 = vmatprep.subr.bf16.mxu0 %v2966_v7  ;;  %2995 = vmatprep.subr.bf16.mxu1 %v2966_v7  ;;  %v2978_v18 = vpack.c.bf16 %v384_v17, %v383_v16  ;;  %v2982_v21 = vpack.c.bf16 %v386_v20, %v385_v19  ;;  %v387_v22 = vld [vmem:[#allocation9 + $0x60] sm:$0xff]  ;;  %v389_v25 = vld [vmem:[#allocation9 + $0x70] sm:$0xff]  ;;  %v390_v26 = vld [vmem:[#allocation9 + $0x78] sm:$0xff]  ;;  %vm1517_vm14 = vcmask 1047559   ;;  %vm1520_vm15 = vcmask 523264  }
  0x7f   : > { %2866 = vmatprep.mubr.f32.mxu0 %v311_v11  ;;  %2914 = vmatprep.mubr.f32.mxu1 %v343_v12  ;;  %v2986_v24 = vpack.c.bf16 %v388_v23, %v387_v22  ;;  %v2990_v27 = vpack.c.bf16 %v390_v26, %v389_v25  ;;  %v312_v28 = vld [vmem:[%s3825_s7 + $0x8] sm:$0xff]  ;;  %v313_v30 = vld [vmem:[%s3825_s7 + $0x10] sm:$0xff]  ;;  %v314_v32 = vld [vmem:[%s3825_s7 + $0x18] sm:$0xff]  ;;  %vm2346_vm0 = vcmask 7168  }
  0x80   : > { %v344_v29 = vld [vmem:[%s3825_s7 + $0x108] sm:$0xff]  ;;  %v345_v31 = vld [vmem:[%s3825_s7 + $0x110] sm:$0xff]  ;;  %v346_v33 = vld [vmem:[%s3825_s7 + $0x118] sm:$0xff] }
  0x81   : > { %2969 = vmatpush3.bf16.msra.mxu0 %v2966_v7  ;;  %3003 = vmatpush3.bf16.msra.mxu1 %v2966_v7  ;;  %v315_v34 = vld [vmem:[%s3825_s7 + $0x20] sm:$0xff]  ;;  %v316_v36 = vld [vmem:[%s3825_s7 + $0x28] sm:$0xff]  ;;  %v349_v38 = vld [vmem:[%s3825_s7 + $0x130] sm:$0xff] }
  0x82   : > { %2971 = vmatprep.subr.bf16.mxu0 %v2970_v10  ;;  %2996 = vmatprep.subr.bf16.mxu1 %v2970_v10  ;;  %v347_v35 = vld [vmem:[%s3825_s7 + $0x120] sm:$0xff]  ;;  %v348_v37 = vld [vmem:[%s3825_s7 + $0x128] sm:$0xff]  ;;  %v317_v39 = vld [vmem:[%s3825_s7 + $0x30] sm:$0xff] }
  0x83   : > { %v350_v40 = vld [vmem:[%s3825_s7 + $0x138] sm:$0xff]  ;;  %v319_v42 = vld [vmem:[%s3825_s7 + $0x40] sm:$0xff]  ;;  %v320_v44 = vld [vmem:[%s3825_s7 + $0x48] sm:$0xff] }
  0x84   : > { %v318_v41 = vld [vmem:[%s3825_s7 + $0x38] sm:$0xff]  ;;  %v351_v43 = vld [vmem:[%s3825_s7 + $0x140] sm:$0xff]  ;;  %v352_v45 = vld [vmem:[%s3825_s7 + $0x148] sm:$0xff] }
  0x85   : > { %2973 = vmatpush3.bf16.msra.mxu0 %v2970_v10  ;;  %3004 = vmatpush3.bf16.msra.mxu1 %v2970_v10  ;;  %v321_v46 = vld [vmem:[%s3825_s7 + $0x50] sm:$0xff]  ;;  %v322_v48 = vld [vmem:[%s3825_s7 + $0x58] sm:$0xff]  ;;  %v323_v50 = vld [vmem:[%s3825_s7 + $0x60] sm:$0xff] }
  0x86   : > { %2975 = vmatprep.subr.bf16.mxu0 %v2974_v15  ;;  %2997 = vmatprep.subr.bf16.mxu1 %v2974_v15  ;;  %v353_v47 = vld [vmem:[%s3825_s7 + $0x150] sm:$0xff]  ;;  %v354_v49 = vld [vmem:[%s3825_s7 + $0x158] sm:$0xff]  ;;  %v355_v51 = vld [vmem:[%s3825_s7 + $0x160] sm:$0xff] }
  0x87   : > { %v324_v52 = vld [vmem:[%s3825_s7 + $0x68] sm:$0xff]  ;;  %v357_v54 = vld [vmem:[%s3825_s7 + $0x170] sm:$0xff]  ;;  %v358_v56 = vld [vmem:[%s3825_s7 + $0x178] sm:$0xff] }
  0x88   : > { %v356_v53 = vld [vmem:[%s3825_s7 + $0x168] sm:$0xff]  ;;  %v325_v55 = vld [vmem:[%s3825_s7 + $0x70] sm:$0xff]  ;;  %v326_v57 = vld [vmem:[%s3825_s7 + $0x78] sm:$0xff] }
  0x89   : > { %2977 = vmatpush3.bf16.msra.mxu0 %v2974_v15  ;;  %3005 = vmatpush3.bf16.msra.mxu1 %v2974_v15  ;;  %v359_v58 = vld [vmem:[%s3825_s7 + $0x180] sm:$0xff]  ;;  %v360_v60 = vld [vmem:[%s3825_s7 + $0x188] sm:$0xff]  ;;  %v329_v62 = vld [vmem:[%s3825_s7 + $0x90] sm:$0xff] }
  0x8a   : > { %2979 = vmatprep.subr.bf16.mxu0 %v2978_v18  ;;  %2998 = vmatprep.subr.bf16.mxu1 %v2978_v18  ;;  %v327_v59 = vld [vmem:[%s3825_s7 + $0x80] sm:$0xff]  ;;  %v328_v61 = vld [vmem:[%s3825_s7 + $0x88] sm:$0xff]  ;;  %v361_v63 = vld [vmem:[%s3825_s7 + $0x190] sm:$0xff] }
  0x8b   : > { %v330_v0 = vld [vmem:[%s3825_s7 + $0x98] sm:$0xff]  ;;  %v363_v2 = vld [vmem:[%s3825_s7 + $0x1a0] sm:$0xff]  ;;  %v364_v4 = vld [vmem:[%s3825_s7 + $0x1a8] sm:$0xff] }
  0x8c   : > { %v362_v1 = vld [vmem:[%s3825_s7 + $0x198] sm:$0xff]  ;;  %v331_v3 = vld [vmem:[%s3825_s7 + $0xa0] sm:$0xff]  ;;  %v332_v5 = vld [vmem:[%s3825_s7 + $0xa8] sm:$0xff] }
  0x8d   : > { %2981 = vmatpush3.bf16.msra.mxu0 %v2978_v18  ;;  %3006 = vmatpush3.bf16.msra.mxu1 %v2978_v18  ;;  %v333_v6 = vld [vmem:[%s3825_s7 + $0xb0] sm:$0xff]  ;;  %v334_v8 = vld [vmem:[%s3825_s7 + $0xb8] sm:$0xff]  ;;  %v335_v10 = vld [vmem:[%s3825_s7 + $0xc0] sm:$0xff] }
  0x8e   : > { %2983 = vmatprep.subr.bf16.mxu0 %v2982_v21  ;;  %2999 = vmatprep.subr.bf16.mxu1 %v2982_v21  ;;  %v365_v7 = vld [vmem:[%s3825_s7 + $0x1b0] sm:$0xff]  ;;  %v366_v9 = vld [vmem:[%s3825_s7 + $0x1b8] sm:$0xff]  ;;  %v367_v11 = vld [vmem:[%s3825_s7 + $0x1c0] sm:$0xff] }
  0x8f   : > { %v336_v12 = vld [vmem:[%s3825_s7 + $0xc8] sm:$0xff]  ;;  %v337_v14 = vld [vmem:[%s3825_s7 + $0xd0] sm:$0xff]  ;;  %v338_v16 = vld [vmem:[%s3825_s7 + $0xd8] sm:$0xff] }
  0x90   : > { %v368_v13 = vld [vmem:[%s3825_s7 + $0x1c8] sm:$0xff]  ;;  %v369_v15 = vld [vmem:[%s3825_s7 + $0x1d0] sm:$0xff]  ;;  %v370_v17 = vld [vmem:[%s3825_s7 + $0x1d8] sm:$0xff] }
  0x91   : > { %2985 = vmatpush3.bf16.msra.mxu0 %v2982_v21  ;;  %3007 = vmatpush3.bf16.msra.mxu1 %v2982_v21  ;;  %v371_v18 = vld [vmem:[%s3825_s7 + $0x1e0] sm:$0xff]  ;;  %v372_v20 = vld [vmem:[%s3825_s7 + $0x1e8] sm:$0xff]  ;;  %v341_v22 = vld [vmem:[%s3825_s7 + $0xf0] sm:$0xff] }
  0x92   : > { %2987 = vmatprep.subr.bf16.mxu0 %v2986_v24  ;;  %3000 = vmatprep.subr.bf16.mxu1 %v2986_v24  ;;  %v339_v19 = vld [vmem:[%s3825_s7 + $0xe0] sm:$0xff]  ;;  %v340_v21 = vld [vmem:[%s3825_s7 + $0xe8] sm:$0xff]  ;;  %v373_v23 = vld [vmem:[%s3825_s7 + $0x1f0] sm:$0xff] }
  0x93   : > { %v374_v25 = vld [vmem:[%s3825_s7 + $0x1f8] sm:$0xff]  ;;  %v3909_v26 = vld [vmem:[%s5306_s2] ss:$0 sm:$0xff] }
  0x95   : > { %2989 = vmatpush3.bf16.msra.mxu0 %v2986_v24  ;;  %3008 = vmatpush3.bf16.msra.mxu1 %v2986_v24  ;;  %v342_v24 = vld [vmem:[%s3825_s7 + $0xf8] sm:$0xff] }
  0x96   : > { %2991 = vmatprep.subr.bf16.mxu0 %v2990_v27  ;;  %3001 = vmatprep.subr.bf16.mxu1 %v2990_v27 }
  0x99   : > { %2993 = vmatpush3.bf16.msra.mxu0 %v2990_v27  ;;  %3009 = vmatpush3.bf16.msra.mxu1 %v2990_v27 }
  0x9c   : > { %2867 = vmatmul.mubr.f32.vlgmr.msra.gmra.mrb[0].mxu0 %v312_v28  ;;  %2915 = vmatmul.mubr.f32.vlgmr.msra.gmra.mrb[0].mxu1 %v344_v29 }
  0x9d   : > { %2869 = vmatprep.mubr.f32.mxu0 %v313_v30  ;;  %2917 = vmatprep.mubr.f32.mxu1 %v345_v31 }
  0xa0   : > { %2870 = vmatmul.mubr.f32.gmra.mrb[2].mxu0 %v314_v32  ;;  %2918 = vmatmul.mubr.f32.gmra.mrb[2].mxu1 %v346_v33 }
  0xa1   : > { %2872 = vmatprep.mubr.f32.mxu0 %v315_v34  ;;  %2920 = vmatprep.mubr.f32.mxu1 %v347_v35 }
  0xa4   : > { %2873 = vmatmul.mubr.f32.gmra.mrb[4].mxu0 %v316_v36  ;;  %2921 = vmatmul.mubr.f32.gmra.mrb[4].mxu1 %v348_v37 }
  0xa5   : > { %2923 = vmatprep.mubr.f32.mxu1 %v349_v38  ;;  %2875 = vmatprep.mubr.f32.mxu0 %v317_v39 }
  0xa8   : > { %2924 = vmatmul.mubr.f32.gmra.mrb[6].mxu1 %v350_v40  ;;  %2876 = vmatmul.mubr.f32.gmra.mrb[6].mxu0 %v318_v41 }
  0xa9   : > { %2878 = vmatprep.mubr.f32.mxu0 %v319_v42  ;;  %2926 = vmatprep.mubr.f32.mxu1 %v351_v43 }
  0xac   : > { %2879 = vmatmul.mubr.f32.gmra.mrb[8].mxu0 %v320_v44  ;;  %2927 = vmatmul.mubr.f32.gmra.mrb[8].mxu1 %v352_v45 }
  0xad   : > { %2881 = vmatprep.mubr.f32.mxu0 %v321_v46  ;;  %2929 = vmatprep.mubr.f32.mxu1 %v353_v47 }
  0xb0   : > { %2882 = vmatmul.mubr.f32.gmra.mrb[10].mxu0 %v322_v48  ;;  %2930 = vmatmul.mubr.f32.gmra.mrb[10].mxu1 %v354_v49 }
  0xb1   : > { %2884 = vmatprep.mubr.f32.mxu0 %v323_v50  ;;  %2932 = vmatprep.mubr.f32.mxu1 %v355_v51  ;;  %v3926_v51 = vld [vmem:[%s5307_s3] ss:$0 sm:$0xff] }
  0xb4   : > { %2885 = vmatmul.mubr.f32.gmra.mrb[12].mxu0 %v324_v52  ;;  %2933 = vmatmul.mubr.f32.gmra.mrb[12].mxu1 %v356_v53 }
  0xb5   : > { %2935 = vmatprep.mubr.f32.mxu1 %v357_v54  ;;  %2887 = vmatprep.mubr.f32.mxu0 %v325_v55 }
  0xb8   : > { %2936 = vmatmul.mubr.f32.gmra.mrb[14].mxu1 %v358_v56  ;;  %2888 = vmatmul.mubr.f32.gmra.mrb[14].mxu0 %v326_v57 }
  0xb9   : > { %2938 = vmatprep.mubr.f32.mxu1 %v359_v58  ;;  %2890 = vmatprep.mubr.f32.mxu0 %v327_v59 }
  0xbc   : > { %2939 = vmatmul.mubr.f32.gmra.mrb[16].mxu1 %v360_v60  ;;  %2891 = vmatmul.mubr.f32.gmra.mrb[16].mxu0 %v328_v61 }
  0xbd   : > { %2893 = vmatprep.mubr.f32.mxu0 %v329_v62  ;;  %2941 = vmatprep.mubr.f32.mxu1 %v361_v63 }
  0xc0   : > { %2894 = vmatmul.mubr.f32.gmra.mrb[18].mxu0 %v330_v0  ;;  %2942 = vmatmul.mubr.f32.gmra.mrb[18].mxu1 %v362_v1 }
  0xc1   : > { %2944 = vmatprep.mubr.f32.mxu1 %v363_v2  ;;  %2896 = vmatprep.mubr.f32.mxu0 %v331_v3 }
  0xc4   : > { %2945 = vmatmul.mubr.f32.gmra.mrb[20].mxu1 %v364_v4  ;;  %2897 = vmatmul.mubr.f32.gmra.mrb[20].mxu0 %v332_v5 }
  0xc5   : > { %2899 = vmatprep.mubr.f32.mxu0 %v333_v6  ;;  %2947 = vmatprep.mubr.f32.mxu1 %v365_v7 }
  0xc8   : > { %2900 = vmatmul.mubr.f32.gmra.mrb[22].mxu0 %v334_v8  ;;  %2948 = vmatmul.mubr.f32.gmra.mrb[22].mxu1 %v366_v9 }
  0xc9   : > { %2902 = vmatprep.mubr.f32.mxu0 %v335_v10  ;;  %2950 = vmatprep.mubr.f32.mxu1 %v367_v11 }
  0xcc   : > { %2903 = vmatmul.mubr.f32.gmra.mrb[24].mxu0 %v336_v12  ;;  %2951 = vmatmul.mubr.f32.gmra.mrb[24].mxu1 %v368_v13 }
  0xcd   : > { %2905 = vmatprep.mubr.f32.mxu0 %v337_v14  ;;  %2953 = vmatprep.mubr.f32.mxu1 %v369_v15 }
  0xd0   : > { %2906 = vmatmul.mubr.f32.gmra.mrb[26].mxu0 %v338_v16  ;;  %2954 = vmatmul.mubr.f32.gmra.mrb[26].mxu1 %v370_v17 }
  0xd1   : > { %2956 = vmatprep.mubr.f32.mxu1 %v371_v18  ;;  %2908 = vmatprep.mubr.f32.mxu0 %v339_v19 }
  0xd4   : > { %2957 = vmatmul.mubr.f32.gmra.mrb[28].mxu1 %v372_v20  ;;  %2909 = vmatmul.mubr.f32.gmra.mrb[28].mxu0 %v340_v21 }
  0xd5   : > { %2911 = vmatprep.mubr.f32.mxu0 %v341_v22  ;;  %2959 = vmatprep.mubr.f32.mxu1 %v373_v23 }
  0xd8   : > { %2912 = vmatmul.mubr.f32.gmra.mrb[30].mxu0 %v342_v24  ;;  %2960 = vmatmul.mubr.f32.gmra.mrb[30].mxu1 %v374_v25 }
 0x16f   : > { %v2868_v27 = vpop.f32.mrb[0].mxu0  ;;  %v2916_v28 = vpop.f32.mrb[0].mxu1 }
 0x170   : > { %v470_v29 = vadd.f32 %v2868_v27, %v3909_v26  ;;  %v630_v30 = vadd.f32 %v2916_v28, %v3909_v26  ;;  %v464_v31 = vpop.f32.mrb[1].mxu0  ;;  %v624_v32 = vpop.f32.mrb[1].mxu1 }
 0x171   : > { %v465_v33 = vadd.f32 %v3909_v26, %v464_v31  ;;  %v625_v34 = vadd.f32 %v3909_v26, %v624_v32 }
 0x172   : > { %3138 = vtanh.f32 %v470_v29 }
 0x173   : > { %3140 = vtanh.f32 %v630_v30  ;;  %v2871_v35 = vpop.f32.mrb[2].mxu0  ;;  %v2919_v36 = vpop.f32.mrb[2].mxu1 }
 0x174   : > { %3142 = vtanh.f32 %v465_v33  ;;  %v480_v37 = vadd.f32 %v2871_v35, %v3909_v26  ;;  %v474_v38 = vpop.f32.mrb[3].mxu0  ;;  %v640_v39 = vadd.f32 %v2919_v36, %v3909_v26  ;;  %v634_v40 = vpop.f32.mrb[3].mxu1 }
 0x175   : > { %3144 = vtanh.f32 %v625_v34  ;;  %v475_v41 = vadd.f32 %v3909_v26, %v474_v38  ;;  %v635_v42 = vadd.f32 %v3909_v26, %v634_v40 }
 0x176   : > { %3146 = vtanh.f32 %v480_v37 }
 0x177   : > { %3148 = vtanh.f32 %v475_v41  ;;  %v2874_v43 = vpop.f32.mrb[4].mxu0  ;;  %v2922_v44 = vpop.f32.mrb[4].mxu1 }
 0x178   : > { %3150 = vtanh.f32 %v640_v39  ;;  %v490_v45 = vadd.f32 %v2874_v43, %v3909_v26  ;;  %v484_v46 = vpop.f32.mrb[5].mxu0  ;;  %v650_v47 = vadd.f32 %v2922_v44, %v3909_v26  ;;  %v644_v48 = vpop.f32.mrb[5].mxu1 }
 0x179   : > { %3152 = vtanh.f32 %v635_v42  ;;  %v485_v49 = vadd.f32 %v3909_v26, %v484_v46  ;;  %v645_v50 = vadd.f32 %v3909_v26, %v644_v48 }
 0x17a   : > { %3154 = vtanh.f32 %v490_v45 }
 0x17b   : > { %3156 = vtanh.f32 %v485_v49  ;;  %v2925_v52 = vpop.f32.mrb[6].mxu1  ;;  %v2877_v53 = vpop.f32.mrb[6].mxu0 }
 0x17c   : > { %v3139_v54 = vpop.eup %3138  ;;  %3158 = vtanh.f32 %v650_v47  ;;  %v660_v55 = vadd.f32 %v2925_v52, %v3909_v26  ;;  %v654_v56 = vpop.f32.mrb[7].mxu1  ;;  %v500_v57 = vadd.f32 %v2877_v53, %v3909_v26 }
 0x17d   : > { %v494_v58 = vpop.f32.mrb[7].mxu0  ;;  %v3141_v59 = vpop.eup %3140  ;;  %3160 = vtanh.f32 %v645_v50  ;;  %v855_v60 = vmul.f32 %v3139_v54, %v3926_v51  ;;  %v655_v61 = vadd.f32 %v3909_v26, %v654_v56 }
 0x17e   : > { %v495_v62 = vadd.f32 %v3909_v26, %v494_v58  ;;  %v3143_v63 = vpop.eup %3142  ;;  %v887_v0 = vmul.f32 %v3141_v59, %v3926_v51  ;;  %3162 = vtanh.f32 %v660_v55 }
 0x17f   : > { %v3145_v1 = vpop.eup %3144  ;;  %920 = vadd.xlane.f32.xlu0 %v855_v60  ;;  %3164 = vtanh.f32 %v655_v61  ;;  %v2880_v2 = vpop.f32.mrb[8].mxu0  ;;  %v854_v5 = vmul.f32 %v3143_v63, %v3926_v51 }
 0x180   : > { %v2928_v3 = vpop.f32.mrb[8].mxu1  ;;  %v3147_v4 = vpop.eup %3146  ;;  %984 = vadd.xlane.f32.xlu1 %v887_v0  ;;  %3166 = vtanh.f32 %v500_v57  ;;  %v510_v6 = vadd.f32 %v2880_v2, %v3909_v26  ;;  %v886_v25 = vmul.f32 %v3145_v1, %v3926_v51 }
 0x181   : > { %v504_v7 = vpop.f32.mrb[9].mxu0  ;;  %v670_v8 = vadd.f32 %v2928_v3, %v3909_v26  ;;  %v664_v9 = vpop.f32.mrb[9].mxu1  ;;  %v857_v11 = vmul.f32 %v3147_v4, %v3926_v51  ;;  %3168 = vtanh.f32 %v495_v62 }
 0x182   : > { %v3149_v10 = vpop.eup %3148  ;;  %v505_v12 = vadd.f32 %v3909_v26, %v504_v7  ;;  %v665_v13 = vadd.f32 %v3909_v26, %v664_v9  ;;  %3170 = vtanh.f32 %v510_v6 }
 0x183   : > { %v3151_v14 = vpop.eup %3150  ;;  %918 = vadd.xlane.f32.xlu0 %v854_v5  ;;  %v2883_v16 = vpop.f32.mrb[10].mxu0  ;;  %v856_v43 = vmul.f32 %v3149_v10, %v3926_v51 }
 0x184   : > { %v3153_v15 = vpop.eup %3152  ;;  %3172 = vtanh.f32 %v505_v12  ;;  %v2931_v17 = vpop.f32.mrb[10].mxu1  ;;  %924 = vadd.xlane.f32.xlu1 %v857_v11  ;;  %v889_v19 = vmul.f32 %v3151_v14, %v3926_v51  ;;  %v520_v20 = vadd.f32 %v2883_v16, %v3909_v26 }
 0x185   : > { %v3940_v18 = vpop.eup %3154  ;;  %3174 = vtanh.f32 %v670_v8  ;;  %v514_v21 = vpop.f32.mrb[11].mxu0  ;;  %v680_v22 = vadd.f32 %v2931_v17, %v3909_v26  ;;  %v888_v58 = vmul.f32 %v3153_v15, %v3926_v51 }
 0x186   : > { %v674_v23 = vpop.f32.mrb[11].mxu1  ;;  %v3157_v24 = vpop.eup %3156  ;;  %3176 = vtanh.f32 %v665_v13  ;;  %v515_v27 = vadd.f32 %v3909_v26, %v514_v21  ;;  %v859_v8 = vmul.f32 %v3940_v18, %v3926_v51 }
 0x187   : > { %v675_v28 = vadd.f32 %v3909_v26, %v674_v23  ;;  %v3948_v29 = vpop.eup %3158  ;;  %3178 = vtanh.f32 %v520_v20  ;;  %982 = vadd.xlane.f32.xlu0 %v886_v25  ;;  %v858_v31 = vmul.f32 %v3157_v24, %v3926_v51  ;;  %v2886_v32 = vpop.f32.mrb[12].mxu0 }
 0x188   : > { %v3161_v30 = vpop.eup %3160  ;;  %3180 = vtanh.f32 %v515_v27  ;;  %v2934_v33 = vpop.f32.mrb[12].mxu1  ;;  %988 = vadd.xlane.f32.xlu1 %v889_v19  ;;  %v530_v35 = vadd.f32 %v2886_v32, %v3909_v26 }
 0x189   : > { %v3163_v34 = vpop.eup %3162  ;;  %3182 = vtanh.f32 %v680_v22  ;;  %v524_v36 = vpop.f32.mrb[13].mxu0  ;;  %v690_v37 = vadd.f32 %v2934_v33, %v3909_v26  ;;  %v890_v45 = vmul.f32 %v3161_v30, %v3926_v51  ;;  %v891_v22 = vmul.f32 %v3948_v29, %v3926_v51 }
 0x18a   : > { %v684_v38 = vpop.f32.mrb[13].mxu1  ;;  %v3953_v39 = vpop.eup %3164  ;;  %3184 = vtanh.f32 %v675_v28  ;;  %v525_v40 = vadd.f32 %v3909_v26, %v524_v36  ;;  %v893_v60 = vmul.f32 %v3163_v34, %v3926_v51 }
 0x18b   : > { %v685_v41 = vadd.f32 %v3909_v26, %v684_v38  ;;  %v3957_v42 = vpop.eup %3166  ;;  %3186 = vtanh.f32 %v530_v35  ;;  %926 = vadd.xlane.f32.xlu0 %v858_v31  ;;  %v2937_v46 = vpop.f32.mrb[14].mxu1  ;;  %v892_v29 = vmul.f32 %v3953_v39, %v3926_v51 }
 0x18c   : > { %v3169_v44 = vpop.eup %3168  ;;  %3188 = vtanh.f32 %v525_v40  ;;  %v2889_v47 = vpop.f32.mrb[14].mxu0  ;;  %922 = vadd.xlane.f32.xlu1 %v856_v43  ;;  %v700_v49 = vadd.f32 %v2937_v46, %v3909_v26 }
 0x18d   : > { %v3961_v48 = vpop.eup %3170  ;;  %3190 = vtanh.f32 %v690_v37  ;;  %v540_v50 = vadd.f32 %v2889_v47, %v3909_v26  ;;  %v694_v52 = vpop.f32.mrb[15].mxu1  ;;  %v860_v10 = vmul.f32 %v3169_v44, %v3926_v51  ;;  %v861_v37 = vmul.f32 %v3957_v42, %v3926_v51 }
 0x18e   : > { %v534_v53 = vpop.f32.mrb[15].mxu0  ;;  %v3965_v54 = vpop.eup %3172  ;;  %3192 = vtanh.f32 %v685_v41  ;;  %v695_v55 = vadd.f32 %v3909_v26, %v694_v52  ;;  %v863_v44 = vmul.f32 %v3961_v48, %v3926_v51 }
 0x18f   : > { %v535_v56 = vadd.f32 %v3909_v26, %v534_v53  ;;  %v3969_v57 = vpop.eup %3174  ;;  %3194 = vtanh.f32 %v700_v49  ;;  %990 = vadd.xlane.f32.xlu0 %v890_v45  ;;  %v2940_v61 = vpop.f32.mrb[16].mxu1  ;;  %v862_v40 = vmul.f32 %v3965_v54, %v3926_v51 }
 0x190   : > { %v3972_v59 = vpop.eup %3176  ;;  %3196 = vtanh.f32 %v540_v50  ;;  %v2892_v62 = vpop.f32.mrb[16].mxu0  ;;  %986 = vadd.xlane.f32.xlu1 %v888_v58  ;;  %v710_v0 = vadd.f32 %v2940_v61, %v3909_v26 }
 0x191   : > { %v3975_v63 = vpop.eup %3178  ;;  %3198 = vtanh.f32 %v695_v55  ;;  %v550_v1 = vadd.f32 %v2892_v62, %v3909_v26  ;;  %v704_v2 = vpop.f32.mrb[17].mxu1  ;;  %v894_v58 = vmul.f32 %v3972_v59, %v3926_v51 }
 0x192   : > { %v544_v3 = vpop.f32.mrb[17].mxu0  ;;  %v3979_v4 = vpop.eup %3180  ;;  %3200 = vtanh.f32 %v535_v56  ;;  %v705_v5 = vadd.f32 %v3909_v26, %v704_v2  ;;  %v895_v56 = vmul.f32 %v3969_v57, %v3926_v51 }
 0x193   : > { %v545_v6 = vadd.f32 %v3909_v26, %v544_v3  ;;  %v3983_v7 = vpop.eup %3182  ;;  %3202 = vtanh.f32 %v710_v0  ;;  %996 = vadd.xlane.f32.xlu0 %v893_v60  ;;  %v2895_v11 = vpop.f32.mrb[18].mxu0 }
 0x194   : > { %v3987_v9 = vpop.eup %3184  ;;  %3204 = vtanh.f32 %v550_v1  ;;  %v2943_v12 = vpop.f32.mrb[18].mxu1  ;;  %928 = vadd.xlane.f32.xlu1 %v859_v8  ;;  %v560_v14 = vadd.f32 %v2895_v11, %v3909_v26 }
 0x195   : > { %v3990_v13 = vpop.eup %3186  ;;  %3206 = vtanh.f32 %v705_v5  ;;  %v554_v15 = vpop.f32.mrb[19].mxu0  ;;  %v720_v16 = vadd.f32 %v2943_v12, %v3909_v26 }
 0x196   : > { %v714_v17 = vpop.f32.mrb[19].mxu1  ;;  %v3994_v18 = vpop.eup %3188  ;;  %3208 = vtanh.f32 %v545_v6  ;;  %v555_v19 = vadd.f32 %v3909_v26, %v554_v15  ;;  %v865_v15 = vmul.f32 %v3975_v63, %v3926_v51 }
 0x197   : > { %v715_v20 = vadd.f32 %v3909_v26, %v714_v17  ;;  %v3998_v21 = vpop.eup %3190  ;;  %3210 = vtanh.f32 %v560_v14  ;;  %930 = vadd.xlane.f32.xlu0 %v860_v10  ;;  %v2946_v24 = vpop.f32.mrb[20].mxu1 }
 0x198   : > { %v4002_v23 = vpop.eup %3192  ;;  %3212 = vtanh.f32 %v555_v19  ;;  %v2898_v25 = vpop.f32.mrb[20].mxu0  ;;  %992 = vadd.xlane.f32.xlu1 %v891_v22  ;;  %v730_v28 = vadd.f32 %v2946_v24, %v3909_v26 }
 0x199   : > { %v4004_v27 = vpop.eup %3194  ;;  %3214 = vtanh.f32 %v720_v16  ;;  %v570_v30 = vadd.f32 %v2898_v25, %v3909_v26  ;;  %v724_v31 = vpop.f32.mrb[21].mxu1  ;;  %v864_v16 = vmul.f32 %v3979_v4, %v3926_v51 }
 0x19a   : > { %v564_v32 = vpop.f32.mrb[21].mxu0  ;;  %v4008_v33 = vpop.eup %3196  ;;  %3216 = vtanh.f32 %v715_v20  ;;  %v725_v34 = vadd.f32 %v3909_v26, %v724_v31 }
 0x19b   : > { %v565_v35 = vadd.f32 %v3909_v26, %v564_v32  ;;  %v4014_v36 = vpop.eup %3198  ;;  %3218 = vtanh.f32 %v730_v28  ;;  %994 = vadd.xlane.f32.xlu0 %v892_v29  ;;  %v2901_v41 = vpop.f32.mrb[22].mxu0 }
 0x19c   : > { %v4018_v38 = vpop.eup %3200  ;;  %3220 = vtanh.f32 %v570_v30  ;;  %v2949_v39 = vpop.f32.mrb[22].mxu1  ;;  %932 = vadd.xlane.f32.xlu1 %v861_v37  ;;  %v580_v45 = vadd.f32 %v2901_v41, %v3909_v26  ;;  %v896_v41 = vmul.f32 %v3987_v9, %v3926_v51 }
 0x19d   : > { %v3203_v43 = vpop.eup %3202  ;;  %3222 = vtanh.f32 %v725_v34  ;;  %v574_v46 = vpop.f32.mrb[23].mxu0  ;;  %v740_v42 = vadd.f32 %v2949_v39, %v3909_v26 }
 0x19e   : > { %v734_v47 = vpop.f32.mrb[23].mxu1  ;;  %v3205_v49 = vpop.eup %3204  ;;  %v4027_v50 = vmul.f32 %v3203_v43, %v3926_v51  ;;  %3224 = vtanh.f32 %v565_v35  ;;  %v575_v52 = vadd.f32 %v3909_v26, %v574_v46 }
 0x19f   : > { %v735_v53 = vadd.f32 %v3909_v26, %v734_v47  ;;  %v3207_v54 = vpop.eup %3206  ;;  %v4032_v55 = vmul.f32 %v3205_v49, %v3926_v51  ;;  %3226 = vtanh.f32 %v580_v45  ;;  %934 = vadd.xlane.f32.xlu0 %v862_v40  ;;  %v2904_v61 = vpop.f32.mrb[24].mxu0  ;;  %v897_v40 = vmul.f32 %v3983_v7, %v3926_v51 }
 0x1a0   : > { %v3209_v48 = vpop.eup %3208  ;;  %v4039_v60 = vmul.f32 %v3207_v54, %v3926_v51  ;;  %3228 = vtanh.f32 %v575_v52  ;;  %v2952_v62 = vpop.f32.mrb[24].mxu1  ;;  %936 = vadd.xlane.f32.xlu1 %v863_v44  ;;  %v590_v2 = vadd.f32 %v2904_v61, %v3909_v26  ;;  %v867_v61 = vmul.f32 %v3990_v13, %v3926_v51 }
 0x1a1   : > { %v3211_v0 = vpop.eup %3210  ;;  %v4042_v1 = vmul.f32 %v3209_v48, %v3926_v51  ;;  %3230 = vtanh.f32 %v740_v42  ;;  %v584_v3 = vpop.f32.mrb[25].mxu0  ;;  %v750_v57 = vadd.f32 %v2952_v62, %v3909_v26  ;;  %v866_v62 = vmul.f32 %v3994_v18, %v3926_v51 }
 0x1a2   : > { %v744_v5 = vpop.f32.mrb[25].mxu1  ;;  %v3213_v6 = vpop.eup %3212  ;;  %v4047_v59 = vmul.f32 %v3211_v0, %v3926_v51  ;;  %3232 = vtanh.f32 %v735_v53  ;;  %v585_v8 = vadd.f32 %v3909_v26, %v584_v3 }
 0x1a3   : > { %v745_v10 = vadd.f32 %v3909_v26, %v744_v5  ;;  %v3215_v11 = vpop.eup %3214  ;;  %v4052_v12 = vmul.f32 %v3213_v6, %v3926_v51  ;;  %3234 = vtanh.f32 %v590_v2  ;;  %998 = vadd.xlane.f32.xlu0 %v894_v58  ;;  %v2907_v19 = vpop.f32.mrb[26].mxu0 }
 0x1a4   : > { %v3217_v14 = vpop.eup %3216  ;;  %v4059_v17 = vmul.f32 %v3215_v11, %v3926_v51  ;;  %3236 = vtanh.f32 %v585_v8  ;;  %v2955_v20 = vpop.f32.mrb[26].mxu1  ;;  %1000 = vadd.xlane.f32.xlu1 %v895_v56  ;;  %v600_v25 = vadd.f32 %v2907_v19, %v3909_v26 }
 0x1a5   : > { %v3219_v22 = vpop.eup %3218  ;;  %v4062_v24 = vmul.f32 %v3217_v14, %v3926_v51  ;;  %3238 = vtanh.f32 %v750_v57  ;;  %v594_v28 = vpop.f32.mrb[27].mxu0  ;;  %v760_v63 = vadd.f32 %v2955_v20, %v3909_v26 }
 0x1a6   : > { %v754_v30 = vpop.f32.mrb[27].mxu1  ;;  %v3221_v31 = vpop.eup %3220  ;;  %v4067_v4 = vmul.f32 %v3219_v22, %v3926_v51  ;;  %3240 = vtanh.f32 %v745_v10  ;;  %v595_v32 = vadd.f32 %v3909_v26, %v594_v28  ;;  %v898_v22 = vmul.f32 %v4002_v23, %v3926_v51 }
 0x1a7   : > { %v755_v29 = vadd.f32 %v3909_v26, %v754_v30  ;;  %v3223_v34 = vpop.eup %3222  ;;  %v4072_v35 = vmul.f32 %v3221_v31, %v3926_v51  ;;  %3242 = vtanh.f32 %v600_v25  ;;  %938 = vadd.xlane.f32.xlu0 %v864_v16  ;;  %v2958_v43 = vpop.f32.mrb[28].mxu1  ;;  %v901_v23 = vmul.f32 %v4004_v27, %v3926_v51 }
 0x1a8   : > { %v3225_v37 = vpop.eup %3224  ;;  %3244 = vtanh.f32 %v595_v32  ;;  %v4079_v39 = vmul.f32 %v3223_v34, %v3926_v51  ;;  %v2910_v44 = vpop.f32.mrb[28].mxu0  ;;  %940 = vadd.xlane.f32.xlu1 %v865_v15  ;;  %v770_v42 = vadd.f32 %v2958_v43, %v3909_v26 }
 0x1a9   : > { %v3227_v45 = vpop.eup %3226  ;;  %v4082_v46 = vmul.f32 %v3225_v37, %v3926_v51  ;;  %3246 = vtanh.f32 %v760_v63  ;;  %v610_v47 = vadd.f32 %v2910_v44, %v3909_v26  ;;  %v764_v7 = vpop.f32.mrb[29].mxu1  ;;  %v899_v63 = vmul.f32 %v3998_v21, %v3926_v51 }
 0x1aa   : > { %v604_v49 = vpop.f32.mrb[29].mxu0  ;;  %v3229_v52 = vpop.eup %3228  ;;  %v4087_v9 = vmul.f32 %v3227_v45, %v3926_v51  ;;  %3248 = vtanh.f32 %v755_v29  ;;  %v765_v53 = vadd.f32 %v3909_v26, %v764_v7  ;;  %v869_v21 = vmul.f32 %v4008_v33, %v3926_v51 }
 0x1ab   : > { %v605_v54 = vadd.f32 %v3909_v26, %v604_v49  ;;  %v3231_v48 = vpop.eup %3230  ;;  %v4092_v56 = vmul.f32 %v3229_v52, %v3926_v51  ;;  %3250 = vtanh.f32 %v770_v42  ;;  %1002 = vadd.xlane.f32.xlu0 %v896_v41  ;;  %v2913_v2 = vpop.f32.mrb[30].mxu0  ;;  %v868_v33 = vmul.f32 %v4018_v38, %v3926_v51 }
 0x1ac   : > { %v3233_v58 = vpop.eup %3232  ;;  %v4099_v0 = vmul.f32 %v3231_v48, %v3926_v51  ;;  %3252 = vtanh.f32 %v610_v47  ;;  %v2961_v3 = vpop.f32.mrb[30].mxu1  ;;  %1004 = vadd.xlane.f32.xlu1 %v897_v40  ;;  %v620_v6 = vadd.f32 %v2913_v2, %v3909_v26  ;;  %v900_v48 = vmul.f32 %v4014_v36, %v3926_v51 }
 0x1ad   : > { %v3235_v57 = vpop.eup %3234  ;;  %v4102_v5 = vmul.f32 %v3233_v58, %v3926_v51  ;;  %3254 = vtanh.f32 %v765_v53  ;;  %v614_v8 = vpop.f32.mrb[31].mxu0  ;;  %v780_v13 = vadd.f32 %v2961_v3, %v3909_v26 }
 0x1ae   : > { %v774_v10 = vpop.f32.mrb[31].mxu1  ;;  %v3237_v11 = vpop.eup %3236  ;;  %v4107_v18 = vmul.f32 %v3235_v57, %v3926_v51  ;;  %3256 = vtanh.f32 %v605_v54  ;;  %v615_v14 = vadd.f32 %v3909_v26, %v614_v8 }
 0x1af   : > { %v775_v15 = vadd.f32 %v3909_v26, %v774_v10  ;;  %v3239_v16 = vpop.eup %3238  ;;  %v878_v19 = vmul.f32 %v3237_v11, %v3926_v51  ;;  %3258 = vtanh.f32 %v620_v6  ;;  %942 = vadd.xlane.f32.xlu0 %v866_v62 }
 0x1b0   : > { %v3241_v20 = vpop.eup %3240  ;;  %v911_v25 = vmul.f32 %v3239_v16, %v3926_v51  ;;  %3260 = vtanh.f32 %v615_v14  ;;  %944 = vadd.xlane.f32.xlu1 %v867_v61 }
 0x1b1   : > { %v3243_v28 = vpop.eup %3242  ;;  %v910_v30 = vmul.f32 %v3241_v20, %v3926_v51  ;;  %3262 = vtanh.f32 %v780_v13 }
 0x1b2   : > { %v3245_v26 = vpop.eup %3244  ;;  %v881_v31 = vmul.f32 %v3243_v28, %v3926_v51  ;;  %3264 = vtanh.f32 %v775_v15  ;;  %v1177_v28 = vlaneseq }
 0x1b3   : > { %v3247_v32 = vpop.eup %3246  ;;  %v880_v29 = vmul.f32 %v3245_v26, %v3926_v51  ;;  %1006 = vadd.xlane.f32.xlu0 %v898_v22 }
 0x1b4   : > { %v3249_v34 = vpop.eup %3248  ;;  %v913_v37 = vmul.f32 %v3247_v32, %v3926_v51  ;;  %1008 = vadd.xlane.f32.xlu1 %v899_v63  ;;  %v1178_v26 = vand.u32 127, %v1177_v28 }
 0x1b5   : > { %v3251_v40 = vpop.eup %3250  ;;  %v912_v41 = vmul.f32 %v3249_v34, %v3926_v51  ;;  %v4219_v34 = vshrl.u32 %v1177_v28, 7 }
 0x1b6   : > { %v3253_v43 = vpop.eup %3252  ;;  %v915_v44 = vmul.f32 %v3251_v40, %v3926_v51  ;;  %v1190_v32 = vadd.s32 4294967280, %v1178_v26  ;;  %v1197_v40 = vadd.s32 4294967272, %v1178_v26 }
 0x1b7   : > { %v3255_v45 = vpop.eup %3254  ;;  %v883_v42 = vmul.f32 %v3253_v43, %v3926_v51  ;;  %1012 = vadd.xlane.f32.xlu0 %v901_v23  ;;  %v1183_v23 = vadd.s32 4294967288, %v1178_v26 }
 0x1b8   : > { %v3257_v47 = vpop.eup %3256  ;;  %v914_v7 = vmul.f32 %v3255_v45, %v3926_v51  ;;  %948 = vadd.xlane.f32.xlu1 %v869_v21  ;;  %v4224_v21 = vsub.s32 %v1178_v26, %v4219_v34 }
 0x1b9   : > { %v3259_v27 = vpop.eup %3258  ;;  %v882_v49 = vmul.f32 %v3257_v47, %v3926_v51  ;;  %v4240_v47 = vsub.s32 %v1183_v23, %v4219_v34 }
 0x1ba   : > { %v3261_v52 = vpop.eup %3260  ;;  %v885_v53 = vmul.f32 %v3259_v27, %v3926_v51  ;;  %5377 = vst [vmem:[#allocation26_spill] sm:$0xff] %v4224_v21 }
 0x1bb   : > { %v3263_v54 = vpop.eup %3262  ;;  %v884_v58 = vmul.f32 %v3261_v52, %v3926_v51  ;;  %946 = vadd.xlane.f32.xlu0 %v868_v33  ;;  %5379 = vst [vmem:[#allocation28_spill] sm:$0xff] %v4240_v47  ;;  %v1204_v33 = vadd.s32 4294967264, %v1178_v26 }
 0x1bc   : > { %v3265_v61 = vpop.eup %3264  ;;  %v917_v62 = vmul.f32 %v3263_v54, %v3926_v51  ;;  %1010 = vadd.xlane.f32.xlu1 %v900_v48 }
 0x1bd   : > { %v916_v2 = vmul.f32 %v3265_v61, %v3926_v51  ;;  %v1211_v61 = vadd.s32 4294967256, %v1178_v26  ;;  %v4279_v28 = vsub.s32 %v1204_v33, %v4219_v34 }
 0x1bf   : > { %1016 = vadd.xlane.f32.xlu0 %v4027_v50 }
 0x1c0   : > { %952 = vadd.xlane.f32.xlu1 %v4032_v55 }
 0x1c3   : > { %950 = vadd.xlane.f32.xlu0 %v4042_v1 }
 0x1c4   : > { %1014 = vadd.xlane.f32.xlu1 %v4039_v60 }
 0x1c7   : > { %954 = vadd.xlane.f32.xlu0 %v4052_v12 }
 0x1c8   : > { %956 = vadd.xlane.f32.xlu1 %v4047_v59 }
 0x1cb   : > { %1018 = vadd.xlane.f32.xlu0 %v4062_v24 }
 0x1cc   : > { %1020 = vadd.xlane.f32.xlu1 %v4059_v17 }
 0x1cf   : > { %1024 = vadd.xlane.f32.xlu0 %v4067_v4 }
 0x1d0   : > { %960 = vadd.xlane.f32.xlu1 %v4072_v35 }
 0x1d3   : > { %958 = vadd.xlane.f32.xlu0 %v4082_v46 }
 0x1d4   : > { %964 = vadd.xlane.f32.xlu1 %v4087_v9 }
 0x1d7   : > { %1022 = vadd.xlane.f32.xlu0 %v4079_v39 }
 0x1d8   : > { %1028 = vadd.xlane.f32.xlu1 %v4099_v0 }
 0x1db   : > { %962 = vadd.xlane.f32.xlu0 %v4092_v56 }
 0x1dc   : > { %1026 = vadd.xlane.f32.xlu1 %v4102_v5 }
 0x1df   : > { %968 = vadd.xlane.f32.xlu0 %v4107_v18 }
 0x1e0   : > { %966 = vadd.xlane.f32.xlu1 %v878_v19 }
 0x1e3   : > { %1032 = vadd.xlane.f32.xlu0 %v911_v25 }
 0x1e4   : > { %1030 = vadd.xlane.f32.xlu1 %v910_v30 }
 0x1e7   : > { %972 = vadd.xlane.f32.xlu0 %v881_v31 }
 0x1e8   : > { %1036 = vadd.xlane.f32.xlu1 %v913_v37  ;;  %v4221_v37 = vstv %s1046_s18 }
 0x1eb   : > { %1034 = vadd.xlane.f32.xlu0 %v912_v41 }
 0x1ec   : > { %970 = vadd.xlane.f32.xlu1 %v880_v29 }
 0x1ef   : > { %1040 = vadd.xlane.f32.xlu0 %v915_v44  ;;  %v4232_v44 = vsub.s32 %v1190_v32, %v4219_v34 }
 0x1f0   : > { %976 = vadd.xlane.f32.xlu1 %v883_v42 }
 0x1f1   : > { %5378 = vst [vmem:[#allocation27_spill] sm:$0xff] %v4232_v44 }
 0x1f3   : > { %974 = vadd.xlane.f32.xlu0 %v882_v49  ;;  %v4249_v49 = vsub.s32 %v1197_v40, %v4219_v34 }
 0x1f4   : > { %1038 = vadd.xlane.f32.xlu1 %v914_v7 }
 0x1f7   : > { %978 = vadd.xlane.f32.xlu0 %v884_v58 }
 0x1f8   : > { %980 = vadd.xlane.f32.xlu1 %v885_v53 }
 0x1fb   : > { %1042 = vadd.xlane.f32.xlu0 %v916_v2 }
 0x1fc   : > { %1044 = vadd.xlane.f32.xlu1 %v917_v62 }
 0x20c   : > { %v921_v51 = vpop.xlane.xlu0 %920 }
 0x20d   : > { %v985_v36 = vpop.xlane.xlu1 %984  ;;  %v4243_v7 = vadd.f32 %v4221_v37, %v921_v51 }
 0x20e   : > { %v4259_v48 = vadd.f32 %v4221_v37, %v985_v36 }
 0x20f   : > { %v1187_v2 = vrot.slane %v4243_v7, %v4240_v47 }
 0x210   : > { %v919_v38 = vpop.xlane.xlu0 %918  ;;  %5382 = vst [vmem:[#allocation31_spill] sm:$0xff] %v4259_v48 }
 0x211   : > { %v4155_v50 = vpop.xlane.xlu1 %924  ;;  %v4227_v41 = vadd.f32 %v4221_v37, %v919_v38  ;;  %v1225_v38 = vadd.s32 4294967240, %v1178_v26 }
 0x212   : > { %v4269_v51 = vadd.f32 %v4221_v37, %v4155_v50 }
 0x213   : > { %v1182_v52 = vrot.slane %v4227_v41, %v4224_v21 }
 0x214   : > { %v983_v55 = vpop.xlane.xlu0 %982  ;;  %5383 = vst [vmem:[#allocation32_spill] sm:$0xff] %v4269_v51  ;;  %v1201_v33 = vrot.slane %v4269_v51, %v4249_v49 }
 0x215   : > { %v4157_v60 = vpop.xlane.xlu1 %988  ;;  %v4246_v27 = vadd.f32 %v4221_v37, %v983_v55 }
 0x216   : > { %v4273_v36 = vadd.f32 %v4221_v37, %v4157_v60  ;;  %v1356_v60 = vrot.slane %v4259_v48, %v4240_v47 }
 0x217   : > { %5380 = vst [vmem:[#allocation29_spill] sm:$0xff] %v4246_v27  ;;  %v1352_v55 = vrot.slane %v4246_v27, %v4224_v21 }
 0x218   : > { %v4159_v1 = vpop.xlane.xlu0 %926  ;;  %5384 = vst [vmem:[#allocation33_spill] sm:$0xff] %v4273_v36 }
 0x219   : > { %v923_v59 = vpop.xlane.xlu1 %922  ;;  %v4290_v40 = vadd.f32 %v4221_v37, %v4159_v1  ;;  %v1366_v1 = vrot.slane %v4273_v36, %v4249_v49 }
 0x21a   : > { %v4235_v45 = vadd.f32 %v4221_v37, %v923_v59  ;;  %v1218_v59 = vadd.s32 4294967248, %v1178_v26  ;;  %v4293_v26 = vsub.s32 %v1211_v61, %v4219_v34 }
 0x21b   : > { %5385 = vst [vmem:[#allocation34_spill] sm:$0xff] %v4290_v40 }
 0x21c   : > { %v4161_v12 = vpop.xlane.xlu0 %990  ;;  %v1194_v58 = vrot.slane %v4235_v45, %v4232_v44  ;;  %v4310_v61 = vsub.s32 %v1218_v59, %v4219_v34 }
 0x21d   : > { %v987_v17 = vpop.xlane.xlu1 %986 }
 0x21e   : > { %v4254_v53 = vadd.f32 %v4221_v37, %v987_v17  ;;  %v1189_v17 = vsel %vm1188_vm1, %v1187_v2, %v1182_v52  ;;  %v4301_v2 = vadd.f32 %v4221_v37, %v4161_v12 }
 0x21f   : > { %v1196_v23 = vsel %vm1195_vm2, %v1194_v58, %v1189_v17  ;;  %v1357_v58 = vsel %vm1188_vm1, %v1356_v60, %v1352_v55  ;;  %v1208_v55 = vrot.slane %v4290_v40, %v4279_v28 }
 0x220   : > { %v4163_v24 = vpop.xlane.xlu0 %996  ;;  %5381 = vst [vmem:[#allocation30_spill] sm:$0xff] %v4254_v53  ;;  %v1361_v50 = vrot.slane %v4254_v53, %v4232_v44  ;;  %5386 = vst [vmem:[#allocation35_spill] sm:$0xff] %v4301_v2  ;;  %v4304_v53 = vsub.s32 %v1225_v38, %v4219_v34  ;;  %v1203_v17 = vsel %vm1202_vm3, %v1201_v33, %v1196_v23 }
 0x221   : > { %v4165_v4 = vpop.xlane.xlu1 %928 }
 0x222   : > { %v1362_v27 = vsel %vm1195_vm2, %v1361_v50, %v1357_v58  ;;  %v4328_v59 = vadd.f32 %v4221_v37, %v4165_v4  ;;  %v4332_v50 = vadd.f32 %v4221_v37, %v4163_v24 }
 0x223   : > { %v1367_v33 = vsel %vm1202_vm3, %v1366_v1, %v1362_v27 }
 0x224   : > { %v4167_v35 = vpop.xlane.xlu0 %930  ;;  %5388 = vst [vmem:[#allocation37_spill] sm:$0xff] %v4328_v59 }
 0x225   : > { %v4169_v39 = vpop.xlane.xlu1 %992  ;;  %v4344_v23 = vadd.f32 %v4221_v37, %v4167_v35 }
 0x226   : > { %v4358_v58 = vadd.f32 %v4221_v37, %v4169_v39 }
 0x227   : > { %5390 = vst [vmem:[#allocation39_spill] sm:$0xff] %v4344_v23 }
 0x228   : > { %v4171_v46 = vpop.xlane.xlu0 %994  ;;  %5393 = vst [vmem:[#allocation42_spill] sm:$0xff] %v4358_v58 }
 0x229   : > { %v4173_v9 = vpop.xlane.xlu1 %932 }
 0x22c   : > { %v4175_v56 = vpop.xlane.xlu0 %934 }
 0x22d   : > { %v4177_v0 = vpop.xlane.xlu1 %936  ;;  %v4320_v38 = vadd.f32 %v4221_v37, %v4175_v56  ;;  %v1371_v56 = vrot.slane %v4301_v2, %v4279_v28 }
 0x22e   : > { %v4316_v12 = vadd.f32 %v4221_v37, %v4177_v0 }
 0x22f   : > { %5387 = vst [vmem:[#allocation36_spill] sm:$0xff] %v4320_v38  ;;  %v1372_v40 = vsel %vm1209_vm4, %v1371_v56, %v1367_v33 }
 0x230   : > { %v4179_v3 = vpop.xlane.xlu0 %998 }
 0x231   : > { %v4181_v57 = vpop.xlane.xlu1 %1000  ;;  %v4352_v24 = vadd.f32 %v4221_v37, %v4179_v3  ;;  %v1239_v3 = vrot.slane %v4316_v12, %v4240_v47 }
 0x232   : > { %v4348_v4 = vadd.f32 %v4221_v37, %v4181_v57  ;;  %v4366_v57 = vadd.f32 %v4221_v37, %v4171_v46 }
 0x233   : > { %5392 = vst [vmem:[#allocation41_spill] sm:$0xff] %v4352_v24 }
 0x234   : > { %v4183_v5 = vpop.xlane.xlu0 %938  ;;  %5391 = vst [vmem:[#allocation40_spill] sm:$0xff] %v4348_v4  ;;  %5395 = vst [vmem:[#allocation44_spill] sm:$0xff] %v4366_v57  ;;  %v1395_v36 = vrot.slane %v4348_v4, %v4240_v47 }
 0x235   : > { %v4185_v6 = vpop.xlane.xlu1 %940  ;;  %v4336_v0 = vadd.f32 %v4221_v37, %v4183_v5  ;;  %v1210_v5 = vsel %vm1209_vm4, %v1208_v55, %v1203_v17  ;;  %v1235_v17 = vrot.slane %v4320_v38, %v4224_v21  ;;  %v1391_v38 = vrot.slane %v4352_v24, %v4224_v21 }
 0x236   : > { %v4374_v27 = vadd.f32 %v4221_v37, %v4185_v6  ;;  %v1222_v6 = vrot.slane %v4344_v23, %v4310_v61  ;;  %v1381_v24 = vrot.slane %v4366_v57, %v4310_v61 }
 0x237   : > { %5389 = vst [vmem:[#allocation38_spill] sm:$0xff] %v4336_v0  ;;  %v1244_v46 = vrot.slane %v4336_v0, %v4232_v44  ;;  %v1376_v0 = vrot.slane %v4358_v58, %v4293_v26 }
 0x238   : > { %v4187_v8 = vpop.xlane.xlu0 %1002  ;;  %5396 = vst [vmem:[#allocation45_spill] sm:$0xff] %v4374_v27 }
 0x239   : > { %v4189_v13 = vpop.xlane.xlu1 %1004  ;;  %v4362_v35 = vadd.f32 %v4221_v37, %v4187_v8  ;;  %v1215_v8 = vrot.slane %v4328_v59, %v4293_v26  ;;  %v1249_v59 = vrot.slane %v4374_v27, %v4249_v49  ;;  %v1377_v56 = vsel %vm1216_vm5, %v1376_v0, %v1372_v40 }
 0x23a   : > { %v4398_v1 = vadd.f32 %v4221_v37, %v4189_v13  ;;  %v1240_v13 = vsel %vm1188_vm1, %v1239_v3, %v1235_v17  ;;  %v1396_v17 = vsel %vm1188_vm1, %v1395_v36, %v1391_v38 }
 0x23b   : > { %5394 = vst [vmem:[#allocation43_spill] sm:$0xff] %v4362_v35  ;;  %v1400_v23 = vrot.slane %v4362_v35, %v4232_v44  ;;  %v1217_v35 = vsel %vm1216_vm5, %v1215_v8, %v1210_v5 }
 0x23c   : > { %v4191_v10 = vpop.xlane.xlu0 %942  ;;  %5397 = vst [vmem:[#allocation46_spill] sm:$0xff] %v4398_v1  ;;  %v1224_v3 = vsel %vm1223_vm6, %v1222_v6, %v1217_v35  ;;  %v1405_v27 = vrot.slane %v4398_v1, %v4249_v49  ;;  %v4441_v35 = vsel %vm1223_vm6, %v1381_v24, %v1377_v56 }
 0x23d   : > { %v4193_v11 = vpop.xlane.xlu1 %944  ;;  %v4386_v55 = vadd.f32 %v4221_v37, %v4191_v10  ;;  %v4404_v10 = vadd.f32 %v4221_v37, %v4173_v9  ;;  %v1401_v33 = vsel %vm1195_vm2, %v1400_v23, %v1396_v17 }
 0x23e   : > { %v4419_v58 = vadd.f32 %v4221_v37, %v4193_v11  ;;  %v1406_v6 = vsel %vm1202_vm3, %v1405_v27, %v1401_v33 }
 0x23f   : > { %v1254_v51 = vrot.slane %v4386_v55, %v4279_v28  ;;  %v1229_v5 = vrot.slane %v4404_v10, %v4304_v53 }
 0x240   : > { %v4195_v18 = vpop.xlane.xlu0 %1006  ;;  %v1259_v36 = vrot.slane %v4419_v58, %v4293_v26 }
 0x241   : > { %v4197_v14 = vpop.xlane.xlu1 %1008  ;;  %v4410_v4 = vadd.f32 %v4221_v37, %v4195_v18  ;;  %v1245_v18 = vsel %vm1195_vm2, %v1244_v46, %v1240_v13 }
 0x242   : > { %v4432_v11 = vadd.f32 %v4221_v37, %v4197_v14  ;;  %v1250_v38 = vsel %vm1202_vm3, %v1249_v59, %v1245_v18 }
 0x243   : > { %5398 = vst [vmem:[#allocation47_spill] sm:$0xff] %v4410_v4  ;;  %v1410_v8 = vrot.slane %v4410_v4, %v4279_v28  ;;  %v1255_v0 = vsel %vm1209_vm4, %v1254_v51, %v1250_v38 }
 0x244   : > { %v4199_v15 = vpop.xlane.xlu0 %1012  ;;  %5399 = vst [vmem:[#allocation48_spill] sm:$0xff] %v4432_v11  ;;  %v1260_v18 = vsel %vm1216_vm5, %v1259_v36, %v1255_v0 }
 0x245   : > { %v4201_v16 = vpop.xlane.xlu1 %948  ;;  %v4468_v51 = vadd.f32 %v4221_v37, %v4199_v15  ;;  %v4488_v15 = vsel %vm1230_vm7, %v1229_v5, %v1224_v3 }
 0x248   : > { %v4203_v19 = vpop.xlane.xlu0 %946 }
 0x249   : > { %v4205_v20 = vpop.xlane.xlu1 %1010  ;;  %v4448_v14 = vadd.f32 %v4221_v37, %v4203_v19  ;;  %v1415_v19 = vrot.slane %v4432_v11, %v4293_v26 }
 0x24a   : > { %v4453_v23 = vadd.f32 %v4221_v37, %v4205_v20 }
 0x24c   : > { %v4207_v22 = vpop.xlane.xlu0 %1016  ;;  %5400 = vst [vmem:[#allocation49_spill] sm:$0xff] %v4453_v23 }
 0x24d   : > { %v4209_v25 = vpop.xlane.xlu1 %952  ;;  %v4481_v13 = vadd.f32 %v4221_v37, %v4207_v22  ;;  %v1420_v22 = vrot.slane %v4453_v23, %v4310_v61 }
 0x24f   : > { %5401 = vst [vmem:[#allocation50_spill] sm:$0xff] %v4481_v13 }
 0x250   : > { %v4211_v63 = vpop.xlane.xlu0 %950 }
 0x251   : > { %v4213_v30 = vpop.xlane.xlu1 %1014  ;;  %v4461_v46 = vadd.f32 %v4221_v37, %v4211_v63  ;;  %v4477_v63 = vadd.f32 %v4221_v37, %v4209_v25  ;;  %v1264_v25 = vrot.slane %v4448_v14, %v4310_v61 }
 0x252   : > { %v4457_v24 = vadd.f32 %v4221_v37, %v4213_v30  ;;  %v1411_v30 = vsel %vm1209_vm4, %v1410_v8, %v1406_v6 }
 0x253   : > { %v1274_v3 = vrot.slane %v4461_v46, %v4224_v21  ;;  %v1416_v33 = vsel %vm1216_vm5, %v1415_v19, %v1411_v30  ;;  %v1278_v38 = vrot.slane %v4477_v63, %v4240_v47  ;;  %v1265_v30 = vsel %vm1223_vm6, %v1264_v25, %v1260_v18 }
 0x254   : > { %v4215_v31 = vpop.xlane.xlu0 %954  ;;  %v4536_v1 = vsel %vm1223_vm6, %v1420_v22, %v1416_v33 }
 0x255   : > { %v4217_v29 = vpop.xlane.xlu1 %956  ;;  %v4472_v20 = vadd.f32 %v4221_v37, %v4215_v31  ;;  %v4492_v31 = vadd.f32 %v4221_v37, %v4201_v16 }
 0x256   : > { %v4505_v56 = vadd.f32 %v4221_v37, %v4217_v29  ;;  %v1434_v29 = vrot.slane %v4481_v13, %v4240_v47 }
 0x257   : > { %v1283_v8 = vrot.slane %v4472_v20, %v4232_v44  ;;  %v1269_v19 = vrot.slane %v4492_v31, %v4304_v53 }
 0x258   : > { %v4229_v43 = vpop.xlane.xlu0 %1018  ;;  %v1288_v11 = vrot.slane %v4505_v56, %v4249_v49 }
 0x259   : > { %v4237_v42 = vpop.xlane.xlu1 %1020  ;;  %v4485_v27 = vadd.f32 %v4221_v37, %v4229_v43  ;;  %v1430_v43 = vrot.slane %v4457_v24, %v4224_v21 }
 0x25a   : > { %v4514_v36 = vadd.f32 %v4221_v37, %v4237_v42 }
 0x25b   : > { %5402 = vst [vmem:[#allocation51_spill] sm:$0xff] %v4485_v27  ;;  %v1439_v0 = vrot.slane %v4485_v27, %v4232_v44  ;;  %v1435_v13 = vsel %vm1188_vm1, %v1434_v29, %v1430_v43 }
 0x25c   : > { %v4256_v54 = vpop.xlane.xlu0 %1024  ;;  %5403 = vst [vmem:[#allocation52_spill] sm:$0xff] %v4514_v36 }
 0x25d   : > { %v4263_v62 = vpop.xlane.xlu1 %960  ;;  %v1440_v22 = vsel %vm1195_vm2, %v1439_v0, %v1435_v13 }
 0x260   : > { %v4283_v32 = vpop.xlane.xlu0 %958 }
 0x261   : > { %v4295_v52 = vpop.xlane.xlu1 %964  ;;  %v4524_v6 = vadd.f32 %v4221_v37, %v4283_v32  ;;  %v1279_v32 = vsel %vm1188_vm1, %v1278_v38, %v1274_v3 }
 0x262   : > { %v1284_v18 = vsel %vm1195_vm2, %v1283_v8, %v1279_v32 }
 0x263   : > { %v1293_v43 = vrot.slane %v4524_v6, %v4279_v28 }
 0x264   : > { %v4322_v48 = vpop.xlane.xlu0 %1022 }
 0x265   : > { %v4338_v60 = vpop.xlane.xlu1 %1028  ;;  %v4557_v3 = vadd.f32 %v4221_v37, %v4322_v48  ;;  %v1270_v48 = vsel %vm1230_vm7, %v1269_v19, %v1265_v30 }
 0x267   : > { %5405 = vst [vmem:[#allocation54_spill] sm:$0xff] %v4557_v3 }
 0x268   : > { %v4376_v39 = vpop.xlane.xlu0 %962 }
 0x269   : > { %v4388_v2 = vpop.xlane.xlu1 %1026  ;;  %v4561_v33 = vadd.f32 %v4221_v37, %v4376_v39  ;;  %v4576_v39 = vadd.f32 %v4221_v37, %v4263_v62  ;;  %v4592_v62 = vadd.f32 %v4221_v37, %v4295_v52 }
 0x26a   : > { %v4599_v27 = vadd.f32 %v4221_v37, %v4388_v2 }
 0x26c   : > { %v969_v9 = vpop.xlane.xlu0 %968 }
 0x26d   : > { %v967_v57 = vpop.xlane.xlu1 %966  ;;  %v4533_v5 = vadd.f32 %v4221_v37, %v969_v9  ;;  %v4547_v9 = vadd.f32 %v4221_v37, %v4256_v54 }
 0x26e   : > { %v4530_v42 = vadd.f32 %v4221_v37, %v967_v57  ;;  %v1444_v57 = vrot.slane %v4514_v36, %v4249_v49 }
 0x26f   : > { %5404 = vst [vmem:[#allocation53_spill] sm:$0xff] %v4547_v9 }
 0x270   : > { %v1033_v40 = vpop.xlane.xlu0 %1032  ;;  %v1313_v54 = vrot.slane %v4530_v42, %v4224_v21  ;;  %v1445_v36 = vsel %vm1202_vm3, %v1444_v57, %v1440_v22  ;;  %v1298_v22 = vrot.slane %v4576_v39, %v4293_v26 }
 0x271   : > { %v1031_v59 = vpop.xlane.xlu1 %1030  ;;  %v4571_v8 = vadd.f32 %v4221_v37, %v1033_v40  ;;  %v1289_v40 = vsel %vm1202_vm3, %v1288_v11, %v1284_v18  ;;  %v1303_v11 = vrot.slane %v4561_v33, %v4310_v61 }
 0x272   : > { %v4568_v13 = vadd.f32 %v4221_v37, %v1031_v59  ;;  %v1454_v59 = vrot.slane %v4547_v9, %v4293_v26  ;;  %v1294_v30 = vsel %vm1209_vm4, %v1293_v43, %v1289_v40 }
 0x273   : > { %v1473_v52 = vrot.slane %v4571_v8, %v4240_v47 }
 0x274   : > { %v973_v17 = vpop.xlane.xlu0 %972  ;;  %5406 = vst [vmem:[#allocation55_spill] sm:$0xff] %v4568_v13  ;;  %v1469_v18 = vrot.slane %v4568_v13, %v4224_v21 }
 0x275   : > { %v1037_v16 = vpop.xlane.xlu1 %1036  ;;  %v4588_v19 = vadd.f32 %v4221_v37, %v973_v17 }
 0x278   : > { %v1035_v23 = vpop.xlane.xlu0 %1034 }
 0x279   : > { %v971_v4 = vpop.xlane.xlu1 %970  ;;  %v4581_v0 = vadd.f32 %v4221_v37, %v1035_v23  ;;  %v1449_v23 = vrot.slane %v4557_v3, %v4279_v28 }
 0x27a   : > { %v4550_v25 = vadd.f32 %v4221_v37, %v971_v4  ;;  %v1317_v4 = vrot.slane %v4533_v5, %v4240_v47 }
 0x27b   : > { %5407 = vst [vmem:[#allocation56_spill] sm:$0xff] %v4581_v0  ;;  %v1478_v43 = vrot.slane %v4581_v0, %v4232_v44 }
 0x27c   : > { %v1041_v38 = vpop.xlane.xlu0 %1040  ;;  %v1322_v29 = vrot.slane %v4550_v25, %v4232_v44  ;;  %v1318_v17 = vsel %vm1188_vm1, %v1317_v4, %v1313_v54  ;;  %v4617_v54 = vadd.f32 %v4221_v37, %v1037_v16  ;;  %v1327_v4 = vrot.slane %v4588_v19, %v4249_v49 }
 0x27d   : > { %v977_v32 = vpop.xlane.xlu1 %976  ;;  %v1459_v44 = vrot.slane %v4599_v27, %v4310_v61 }
 0x27e   : > { %v1323_v2 = vsel %vm1195_vm2, %v1322_v29, %v1318_v17  ;;  %v4622_v21 = vadd.f32 %v4221_v37, %v977_v32  ;;  %v1308_v29 = vrot.slane %v4592_v62, %v4304_v53  ;;  %v1450_v17 = vsel %vm1209_vm4, %v1449_v23, %v1445_v36 }
 0x27f   : > { %v1328_v3 = vsel %vm1202_vm3, %v1327_v4, %v1323_v2 }
 0x280   : > { %v975_v57 = vpop.xlane.xlu0 %974 }
 0x281   : > { %v1039_v40 = vpop.xlane.xlu1 %1038  ;;  %v4614_v9 = vadd.f32 %v4221_v37, %v975_v57  ;;  %v1299_v57 = vsel %vm1216_vm5, %v1298_v22, %v1294_v30 }
 0x282   : > { %v4625_v47 = vadd.f32 %v4221_v37, %v1039_v40  ;;  %v1304_v32 = vsel %vm1223_vm6, %v1303_v11, %v1299_v57  ;;  %v1474_v40 = vsel %vm1188_vm1, %v1473_v52, %v1469_v18  ;;  %v1483_v11 = vrot.slane %v4617_v54, %v4249_v49 }
 0x283   : > { %v1332_v16 = vrot.slane %v4614_v9, %v4279_v28  ;;  %v1479_v0 = vsel %vm1195_vm2, %v1478_v43, %v1474_v40  ;;  %v1337_v18 = vrot.slane %v4622_v21, %v4293_v26  ;;  %v4650_v52 = vadd.f32 %v4221_v37, %v1041_v38 }
 0x284   : > { %v979_v13 = vpop.xlane.xlu0 %978  ;;  %v1488_v36 = vrot.slane %v4625_v47, %v4279_v28  ;;  %v1506_v43 = vsel %vm1505_vm8, %v1270_v48, %v4488_v15  ;;  %v1455_v57 = vsel %vm1216_vm5, %v1454_v59, %v1450_v17  ;;  %v1484_v38 = vsel %vm1202_vm3, %v1483_v11, %v1479_v0 }
 0x285   : > { %v1333_v30 = vsel %vm1209_vm4, %v1332_v16, %v1328_v3  ;;  %v981_v23 = vpop.xlane.xlu1 %980  ;;  %v4643_v22 = vadd.f32 %v4221_v37, %v979_v13  ;;  %v4659_v3 = vadd.f32 %v4221_v37, %v4338_v60  ;;  %v1309_v13 = vsel %vm1230_vm7, %v1308_v29, %v1304_v32 }
 0x286   : > { %v4653_v2 = vadd.f32 %v4221_v37, %v981_v23  ;;  %v1338_v40 = vsel %vm1216_vm5, %v1337_v18, %v1333_v30  ;;  %v1460_v15 = vsel %vm1223_vm6, %v1459_v44, %v1455_v57  ;;  %v1489_v60 = vsel %vm1209_vm4, %v1488_v36, %v1484_v38 }
 0x287   : > { %v1342_v4 = vrot.slane %v4643_v22, %v4310_v61  ;;  %v1508_v59 = vsel %vm1507_vm9, %v1309_v13, %v1506_v43  ;;  %v1493_v0 = vrot.slane %v4650_v52, %v4293_v26  ;;  %v1464_v44 = vrot.slane %v4659_v3, %v4304_v53 }
 0x288   : > { %v1347_v16 = vrot.slane %v4653_v2, %v4304_v53  ;;  %v1043_v23 = vpop.xlane.xlu0 %1042  ;;  %v5408_v11 = vrot.slane %v4332_v50, %v4304_v53 }
 0x289   : > { %v1343_v48 = vsel %vm1223_vm6, %v1342_v4, %v1338_v40  ;;  %v1045_v29 = vpop.xlane.xlu1 %1044  ;;  %v4673_v32 = vadd.f32 %v4221_v37, %v1043_v23  ;;  %v1494_v57 = vsel %vm1216_vm5, %v1493_v0, %v1489_v60  ;;  %v4708_v60 = vld [vmem:[#allocation2] sm:$0xff] }
 0x28a   : > { %v1348_v17 = vsel %vm1230_vm7, %v1347_v16, %v1343_v48  ;;  %v4680_v30 = vadd.f32 %v4221_v37, %v1045_v29  ;;  %v1387_v18 = vsel %vm1230_vm7, %v5408_v11, %v4441_v35  ;;  %v5409_v37 = vrot.slane %v4468_v51, %v4304_v53 }
 0x28b   : > { %v1498_v36 = vrot.slane %v4673_v32, %v4310_v61  ;;  %v1510_v43 = vsel %vm1509_vm10, %v1348_v17, %v1508_v59  ;;  %v1465_v16 = vsel %vm1230_vm7, %v1464_v44, %v1460_v15  ;;  %v1534_v44 = vsub.s32 0, %v4219_v34 }
 0x28c   : > { %v1503_v13 = vrot.slane %v4680_v30, %v4304_v53  ;;  %v1426_v4 = vsel %vm1230_vm7, %v5409_v37, %v4536_v1  ;;  %v1512_v38 = vsel %vm1511_vm11, %v1387_v18, %v1510_v43  ;;  %v3629_v1 = vmov 0  }
 0x28d   : > { %v1499_v40 = vsel %vm1223_vm6, %v1498_v36, %v1494_v57  ;;  %v1514_v35 = vsel %vm1513_vm12, %v1426_v4, %v1512_v38  ;;  %3136 = vset.pattern.permute.xlu1 %v3629_v1  ;;  %3137 = vset.pattern.permute.xlu0 %v3629_v1  ;;  %v1538_v36 = vsub.s32 1, %v4219_v34  ;;  %v5412_v1 = vld [vmem:[#allocation34_spill] sm:$0xff] }
 0x28e   : > { %v1504_v23 = vsel %vm1230_vm7, %v1503_v13, %v1499_v40  ;;  %v1516_v48 = vsel %vm1515_vm13, %v1465_v16, %v1514_v35  ;;  %v5410_v35 = vld [vmem:[#allocation32_spill] sm:$0xff] }
 0x28f   : > { %v1518_v29 = vsel %vm1517_vm14, %v1504_v23, %v1516_v48 }
 0x290   : > { %v1521_v59 = vsel %vm1520_vm15, %v1518_v29, -inf  ;;  %v5411_v29 = vld [vmem:[#allocation45_spill] sm:$0xff] }
 0x291   : > { %1522 = vmax.xlane.f32.xlu0 %v1521_v59 }
 0x31e   : > { %v1523_v15 = vpop.xlane.xlu0 %1522 }
 0x31f   : > { %v4711_v0 = vmax.f32 %v4708_v60, %v1523_v15 }
 0x321   : > { %v1525_v17 = vsub.f32 %v4708_v60, %v4711_v0  ;;  %2605 = vst.msk [vmem:[#allocation2] sm:$0xff] %vm2346_vm0, %v4711_v0  ;;  %1530 = vperm.xlu1 %3136, %v4711_v0  }
 0x3a0   : > { %v4720_v11 = vpop.permute.xlu1 %1530 }
 0x3a1   : > { %v1535_v18 = vrot.slane %v4720_v11, %v1534_v44  ;;  %v4724_v43 = vrot.slane %v4720_v11, %v1538_v36  ;;  %v5413_v36 = vld [vmem:[#allocation37_spill] sm:$0xff] }
 0x3a3   : > { %v1573_v13 = vsub.f32 %v4243_v7, %v1535_v18  ;;  %v1572_v37 = vsub.f32 %v4227_v41, %v1535_v18  ;;  %v1574_v4 = vsub.f32 %v4235_v45, %v1535_v18  ;;  %v1581_v57 = vsub.f32 %v4316_v12, %v4724_v43 }
 0x3a4   : > { %v1575_v23 = vsub.f32 %v5410_v35, %v1535_v18  ;;  %v1583_v59 = vsub.f32 %v5411_v29, %v4724_v43  ;;  %v1576_v41 = vsub.f32 %v5412_v1, %v1535_v18  ;;  %v1542_v45 = vsub.s32 2, %v4219_v34  ;;  %v5414_v35 = vld [vmem:[#allocation39_spill] sm:$0xff] }
 0x3a5   : > { %v1638_v38 = vmul.f32 1.442695, %v1573_v13  ;;  %v1636_v16 = vmul.f32 1.442695, %v1572_v37  ;;  %v1640_v40 = vmul.f32 1.442695, %v1574_v4  ;;  %v1585_v12 = vsub.f32 %v4419_v58, %v4724_v43 }
 0x3a6   : > { %v1654_v48 = vmul.f32 1.442695, %v1581_v57  ;;  %v1642_v7 = vmul.f32 1.442695, %v1575_v23  ;;  %v1658_v15 = vmul.f32 1.442695, %v1583_v59  ;;  %v1577_v13 = vsub.f32 %v5413_v36, %v1535_v18 }
 0x3a7   : > { %3266 = vpow2.f32 %v1638_v38  ;;  %v1644_v44 = vmul.f32 1.442695, %v1576_v41  ;;  %v4740_v37 = vrot.slane %v4720_v11, %v1542_v45  ;;  %v1662_v4 = vmul.f32 1.442695, %v1585_v12 }
 0x3a8   : > { %3268 = vpow2.f32 %v1636_v16  ;;  %v1587_v57 = vsub.f32 %v4492_v31, %v4724_v43  ;;  %v1578_v58 = vsub.f32 %v5414_v35, %v1535_v18  ;;  %v1579_v31 = vsub.f32 %v4404_v10, %v1535_v18 }
 0x3a9   : > { %3270 = vpow2.f32 %v1640_v40  ;;  %v1646_v40 = vmul.f32 1.442695, %v1577_v13  ;;  %v1591_v41 = vsub.f32 %v4505_v56, %v4740_v37  ;;  %v1546_v36 = vsub.s32 3, %v4219_v34 }
 0x3aa   : > { %3272 = vpow2.f32 %v1654_v48  ;;  %v1666_v23 = vmul.f32 1.442695, %v1587_v57  ;;  %v1589_v48 = vsub.f32 %v4477_v63, %v4740_v37  ;;  %v1650_v12 = vmul.f32 1.442695, %v1579_v31  ;;  %v5415_v63 = vld [vmem:[#allocation36_spill] sm:$0xff]  ;;  %v5416_v57 = vld [vmem:[#allocation38_spill] sm:$0xff] }
 0x3ab   : > { %3274 = vpow2.f32 %v1642_v7  ;;  %v1648_v7 = vmul.f32 1.442695, %v1578_v58  ;;  %v1674_v13 = vmul.f32 1.442695, %v1591_v41  ;;  %v1593_v10 = vsub.f32 %v4576_v39, %v4740_v37 }
 0x3ac   : > { %3276 = vpow2.f32 %v1658_v15  ;;  %v1670_v1 = vmul.f32 1.442695, %v1589_v48  ;;  %v1595_v35 = vsub.f32 %v4592_v62, %v4740_v37  ;;  %v1584_v48 = vsub.f32 %v4386_v55, %v4724_v43 }
 0x3ad   : > { %3278 = vpow2.f32 %v1644_v44  ;;  %v1580_v44 = vsub.f32 %v5415_v63, %v4724_v43  ;;  %v1550_v63 = vsub.s32 4, %v4219_v34 }
 0x3ae   : > { %3280 = vpow2.f32 %v1662_v4  ;;  %v1660_v62 = vmul.f32 1.442695, %v1584_v48  ;;  %v1594_v48 = vsub.f32 %v4561_v33, %v4740_v37 }
 0x3af   : > { %3282 = vpow2.f32 %v1646_v40  ;;  %v1652_v56 = vmul.f32 1.442695, %v1580_v44  ;;  %v1678_v40 = vmul.f32 1.442695, %v1593_v10  ;;  %v4778_v10 = vrot.slane %v4720_v11, %v1550_v63 }
 0x3b0   : > { %3284 = vpow2.f32 %v1666_v23 }
 0x3b1   : > { %v3267_v38 = vpop.eup %3266  ;;  %3286 = vpow2.f32 %v1648_v7 }
 0x3b2   : > { %v3269_v16 = vpop.eup %3268  ;;  %1834 = vperm.xlu1 %3136, %v3267_v38   ;;  %3288 = vpow2.f32 %v1670_v1  ;;  %v1582_v38 = vsub.f32 %v5416_v57, %v4724_v43  ;;  %v1586_v1 = vsub.f32 %v4448_v14, %v4724_v43  ;;  %v1592_v57 = vsub.f32 %v4524_v6, %v4740_v37 }
 0x3b3   : > { %1831 = vperm.xlu0 %3137, %v3269_v16   ;;  %v3271_v29 = vpop.eup %3270  ;;  %3290 = vpow2.f32 %v1650_v12  ;;  %v4758_v16 = vrot.slane %v4720_v11, %v1546_v36  ;;  %v1588_v12 = vsub.f32 %v4461_v46, %v4740_v37 }
 0x3b4   : > { %v3273_v59 = vpop.eup %3272  ;;  %3292 = vpow2.f32 %v1674_v13  ;;  %v1656_v39 = vmul.f32 1.442695, %v1582_v38  ;;  %v1590_v13 = vsub.f32 %v4472_v20, %v4740_v37  ;;  %v1554_v38 = vsub.s32 5, %v4219_v34  ;;  %v5419_v37 = vld [vmem:[#allocation40_spill] sm:$0xff] }
 0x3b5   : > { %v3275_v45 = vpop.eup %3274  ;;  %3294 = vpow2.f32 %v1652_v56  ;;  %v1601_v14 = vsub.f32 %v4622_v21, %v4758_v16  ;;  %v1598_v63 = vsub.f32 %v4550_v25, %v4758_v16  ;;  %v5420_v25 = vld [vmem:[#allocation35_spill] sm:$0xff] }
 0x3b6   : > { %1837 = vperm.xlu1 %3136, %v3271_v29   ;;  %v3277_v15 = vpop.eup %3276  ;;  %3296 = vpow2.f32 %v1678_v40  ;;  %v1682_v29 = vmul.f32 1.442695, %v1595_v35  ;;  %v1672_v21 = vmul.f32 1.442695, %v1590_v13  ;;  %v5417_v40 = vld [vmem:[#allocation31_spill] sm:$0xff]  ;;  %v4791_v6 = vrot.slane %v4720_v11, %v1554_v38 }
 0x3b7   : > { %1858 = vperm.xlu0 %3137, %v3273_v59   ;;  %v3279_v18 = vpop.eup %3278  ;;  %v1597_v59 = vsub.f32 %v4533_v5, %v4758_v16  ;;  %3298 = vpow2.f32 %v1656_v39  ;;  %v1664_v5 = vmul.f32 1.442695, %v1586_v1  ;;  %v1694_v46 = vmul.f32 1.442695, %v1601_v14 }
 0x3b8   : > { %v3281_v4 = vpop.eup %3280  ;;  %3300 = vpow2.f32 %v1682_v29  ;;  %v1605_v35 = vsub.f32 %v5417_v40, %v4778_v10  ;;  %v1676_v39 = vmul.f32 1.442695, %v1592_v57  ;;  %v1680_v1 = vmul.f32 1.442695, %v1594_v48  ;;  %v5423_v48 = vld [vmem:[#allocation30_spill] sm:$0xff] }
 0x3b9   : > { %v3283_v58 = vpop.eup %3282  ;;  %v1686_v41 = vmul.f32 1.442695, %v1597_v59  ;;  %3302 = vpow2.f32 %v1660_v62  ;;  %v5418_v59 = vld [vmem:[#allocation33_spill] sm:$0xff]  ;;  %v1562_v13 = vsub.s32 7, %v4219_v34  ;;  %v1619_v60 = vsub.f32 %v4468_v51, %v4791_v6 }
 0x3ba   : > { %1840 = vperm.xlu1 %3136, %v3275_v45   ;;  %v3285_v23 = vpop.eup %3284  ;;  %v1599_v45 = vsub.f32 %v4588_v19, %v4758_v16  ;;  %v1668_v19 = vmul.f32 1.442695, %v1588_v12  ;;  %v1702_v29 = vmul.f32 1.442695, %v1605_v35 }
 0x3bb   : > { %1864 = vperm.xlu0 %3137, %v3277_v15   ;;  %v3287_v7 = vpop.eup %3286  ;;  %3304 = vpow2.f32 %v1686_v41  ;;  %v1596_v41 = vsub.f32 %v4530_v42, %v4758_v16  ;;  %v4814_v57 = vrot.slane %v4720_v11, %v1562_v13 }
 0x3bc   : > { %v3289_v31 = vpop.eup %3288  ;;  %v1690_v44 = vmul.f32 1.442695, %v1599_v45  ;;  %3306 = vpow2.f32 %v1664_v5 }
 0x3bd   : > { %v3291_v55 = vpop.eup %3290  ;;  %v1684_v12 = vmul.f32 1.442695, %v1596_v41  ;;  %v5425_v41 = vld [vmem:[#allocation41_spill] sm:$0xff]  ;;  %v1634_v51 = vsub.f32 %v4673_v32, %v4814_v57  ;;  %v3397_v32 = vld [vmem:[%s3825_s7] sm:$0xff] }
 0x3be   : > { %1843 = vperm.xlu1 %3136, %v3279_v18   ;;  %v3293_v15 = vpop.eup %3292  ;;  %3308 = vpow2.f32 %v1690_v44  ;;  %v1603_v18 = vsub.f32 %v4653_v2, %v4758_v16  ;;  %v1558_v2 = vsub.s32 6, %v4219_v34  ;;  %v5421_v34 = vld [vmem:[#allocation51_spill] sm:$0xff] }
 0x3bf   : > { %1870 = vperm.xlu0 %3137, %v3281_v4   ;;  %v3295_v43 = vpop.eup %3294  ;;  %3310 = vpow2.f32 %v1668_v19  ;;  %v1600_v19 = vsub.f32 %v4614_v9, %v4758_v16 }
 0x3c0   : > { %v3297_v36 = vpop.eup %3296  ;;  %3312 = vpow2.f32 %v1694_v46  ;;  %v1698_v20 = vmul.f32 1.442695, %v1603_v18  ;;  %v4798_v45 = vrot.slane %v4720_v11, %v1558_v2  ;;  %v1608_v18 = vsub.f32 %v5420_v25, %v4778_v10  ;;  %v5429_v25 = vld [vmem:[#allocation50_spill] sm:$0xff] }
 0x3c1   : > { %v3299_v4 = vpop.eup %3298  ;;  %3314 = vpow2.f32 %v1672_v21  ;;  %v1602_v21 = vsub.f32 %v4643_v22, %v4758_v16  ;;  %v1629_v22 = vsub.f32 %v4571_v8, %v4814_v57 }
 0x3c2   : > { %1846 = vperm.xlu1 %3136, %v3283_v58   ;;  %v3301_v56 = vpop.eup %3300  ;;  %3316 = vpow2.f32 %v1698_v20  ;;  %v1620_v42 = vsub.f32 %v4457_v24, %v4798_v45  ;;  %v1692_v24 = vmul.f32 1.442695, %v1600_v19  ;;  %v1708_v9 = vmul.f32 1.442695, %v1608_v18 }
 0x3c3   : > { %1876 = vperm.xlu0 %3137, %v3285_v23   ;;  %v3303_v58 = vpop.eup %3302  ;;  %3318 = vpow2.f32 %v1676_v39  ;;  %v1622_v38 = vsub.f32 %v5421_v34, %v4798_v45  ;;  %v1696_v35 = vmul.f32 1.442695, %v1602_v21  ;;  %v1621_v18 = vsub.f32 %v5429_v25, %v4798_v45  ;;  %v5430_v34 = vld [vmem:[#allocation46_spill] sm:$0xff] }
 0x3c4   : > { %3320 = vpow2.f32 %v1702_v29  ;;  %v1732_v46 = vmul.f32 1.442695, %v1620_v42  ;;  %v1606_v29 = vsub.f32 %v5423_v48, %v4778_v10 }
 0x3c5   : > { %v3305_v23 = vpop.eup %3304  ;;  %3322 = vpow2.f32 %v1680_v1  ;;  %v1736_v2 = vmul.f32 1.442695, %v1622_v38  ;;  %v1615_v38 = vsub.f32 %v5430_v34, %v4791_v6 }
 0x3c6   : > { %1849 = vperm.xlu1 %3136, %v3287_v7   ;;  %v1607_v7 = vsub.f32 %v5418_v59, %v4778_v10  ;;  %v1750_v59 = vmul.f32 1.442695, %v1629_v22  ;;  %v1704_v8 = vmul.f32 1.442695, %v1606_v29 }
 0x3c7   : > { %1882 = vperm.xlu0 %3137, %v3289_v31   ;;  %v3307_v31 = vpop.eup %3306 }
 0x3c8   : > { %v3309_v62 = vpop.eup %3308  ;;  %v1706_v33 = vmul.f32 1.442695, %v1607_v7  ;;  %v5424_v7 = vld [vmem:[#allocation47_spill] sm:$0xff] }
 0x3ca   : > { %1852 = vperm.xlu1 %3136, %v3291_v55   ;;  %v1613_v55 = vsub.f32 %v5419_v37, %v4791_v6  ;;  %3324 = vpow2.f32 %v1706_v33  ;;  %v1612_v33 = vsub.f32 %v5425_v41, %v4791_v6  ;;  %v5434_v41 = vld [vmem:[#allocation52_spill] sm:$0xff] }
 0x3cb   : > { %1888 = vperm.xlu0 %3137, %v3293_v15   ;;  %v3311_v15 = vpop.eup %3310  ;;  %3326 = vpow2.f32 %v1684_v12 }
 0x3cc   : > { %v3313_v5 = vpop.eup %3312  ;;  %v1718_v44 = vmul.f32 1.442695, %v1613_v55  ;;  %v5426_v55 = vld [vmem:[#allocation56_spill] sm:$0xff] }
 0x3cd   : > { %v3315_v14 = vpop.eup %3314 }
 0x3ce   : > { %1855 = vperm.xlu1 %3136, %v3295_v43   ;;  %v3317_v43 = vpop.eup %3316  ;;  %3328 = vpow2.f32 %v1718_v44  ;;  %v5427_v44 = vld [vmem:[#allocation43_spill] sm:$0xff] }
 0x3cf   : > { %1894 = vperm.xlu0 %3137, %v3297_v36   ;;  %v1688_v36 = vmul.f32 1.442695, %v1598_v63  ;;  %v1716_v63 = vmul.f32 1.442695, %v1612_v33  ;;  %v1614_v42 = vsub.f32 %v5427_v44, %v4791_v6  ;;  %v1623_v33 = vsub.f32 %v5434_v41, %v4798_v45  ;;  %v3398_v41 = vld [vmem:[%s3825_s7 + $0x10] sm:$0xff] }
 0x3d1   : > { %3330 = vpow2.f32 %v1688_v36 }
 0x3d2   : > { %1861 = vperm.xlu1 %3136, %v3299_v4   ;;  %v3319_v4 = vpop.eup %3318  ;;  %3332 = vpow2.f32 %v1732_v46  ;;  %v1720_v46 = vmul.f32 1.442695, %v1614_v42  ;;  %v1635_v42 = vsub.f32 %v4680_v30, %v4814_v57  ;;  %v1611_v30 = vsub.f32 %v4332_v50, %v4778_v10 }
 0x3d3   : > { %1900 = vperm.xlu0 %3137, %v3301_v56   ;;  %v3321_v56 = vpop.eup %3320  ;;  %3334 = vpow2.f32 %v1692_v24 }
 0x3d4   : > { %v3323_v20 = vpop.eup %3322  ;;  %3336 = vpow2.f32 %v1708_v9  ;;  %v1734_v9 = vmul.f32 1.442695, %v1621_v18 }
 0x3d5   : > { %v3325_v40 = vpop.eup %3324  ;;  %3338 = vpow2.f32 %v1696_v35 }
 0x3d6   : > { %1867 = vperm.xlu1 %3136, %v3303_v58   ;;  %v5422_v58 = vld [vmem:[#allocation29_spill] sm:$0xff]  ;;  %v3327_v11 = vpop.eup %3326  ;;  %3340 = vpow2.f32 %v1736_v2  ;;  %v5432_v2 = vld [vmem:[#allocation55_spill] sm:$0xff] }
 0x3d7   : > { %1906 = vperm.xlu0 %3137, %v3305_v23   ;;  %v1604_v23 = vsub.f32 %v5422_v58, %v4778_v10  ;;  %v1628_v22 = vsub.f32 %v5432_v2, %v4814_v57 }
 0x3d8   : > { %v3329_v16 = vpop.eup %3328 }
 0x3d9   : > { %v1700_v39 = vmul.f32 1.442695, %v1604_v23  ;;  %v1748_v29 = vmul.f32 1.442695, %v1628_v22  ;;  %v5438_v22 = vld [vmem:[#allocation28_spill] sm:$0xff] }
 0x3da   : > { %1873 = vperm.xlu1 %3136, %v3307_v31   ;;  %v1616_v31 = vsub.f32 %v5424_v7, %v4791_v6 }
 0x3db   : > { %1912 = vperm.xlu0 %3137, %v3309_v62   ;;  %v3331_v62 = vpop.eup %3330  ;;  %3342 = vpow2.f32 %v1700_v39 }
 0x3dc   : > { %v3333_v1 = vpop.eup %3332  ;;  %3344 = vpow2.f32 %v1750_v59  ;;  %v1724_v37 = vmul.f32 1.442695, %v1616_v31  ;;  %v5433_v59 = vld [vmem:[#allocation42_spill] sm:$0xff] }
 0x3dd   : > { %3346 = vpow2.f32 %v1704_v8  ;;  %v1609_v7 = vsub.f32 %v5433_v59, %v4778_v10 }
 0x3de   : > { %1879 = vperm.xlu1 %3136, %v3311_v15   ;;  %v1630_v15 = vsub.f32 %v5426_v55, %v4814_v57  ;;  %3348 = vpow2.f32 %v1724_v37  ;;  %v1627_v55 = vsub.f32 %v4659_v3, %v4798_v45 }
 0x3df   : > { %1918 = vperm.xlu0 %3137, %v3313_v5   ;;  %v3335_v5 = vpop.eup %3334  ;;  %3350 = vpow2.f32 %v1716_v63 }
 0x3e0   : > { %v3337_v12 = vpop.eup %3336  ;;  %v1746_v44 = vmul.f32 1.442695, %v1627_v55 }
 0x3e1   : > { %v3339_v19 = vpop.eup %3338 }
 0x3e2   : > { %1885 = vperm.xlu1 %3136, %v3315_v14   ;;  %v1752_v14 = vmul.f32 1.442695, %v1630_v15  ;;  %v3341_v13 = vpop.eup %3340 }
 0x3e3   : > { %1924 = vperm.xlu0 %3137, %v3317_v43   ;;  %v5428_v43 = vld [vmem:[#allocation48_spill] sm:$0xff] }
 0x3e4   : > { %v1617_v36 = vsub.f32 %v5428_v43, %v4791_v6  ;;  %3352 = vpow2.f32 %v1752_v14 }
 0x3e5   : > { %v3343_v24 = vpop.eup %3342  ;;  %3354 = vpow2.f32 %v1720_v46 }
 0x3e6   : > { %1891 = vperm.xlu1 %3136, %v3319_v4   ;;  %v1726_v4 = vmul.f32 1.442695, %v1617_v36  ;;  %v3345_v21 = vpop.eup %3344  ;;  %v5436_v36 = vld [vmem:[#allocation54_spill] sm:$0xff] }
 0x3e7   : > { %1930 = vperm.xlu0 %3137, %v3321_v56   ;;  %v1631_v56 = vsub.f32 %v4617_v54, %v4814_v57  ;;  %v3347_v58 = vpop.eup %3346  ;;  %v1722_v54 = vmul.f32 1.442695, %v1615_v38 }
 0x3e8   : > { %3356 = vpow2.f32 %v1726_v4  ;;  %v3349_v23 = vpop.eup %3348  ;;  %v1526_v4 = vmul.f32 1.442695, %v1525_v17 }
 0x3e9   : > { %3358 = vpow2.f32 %v1734_v9  ;;  %v3351_v39 = vpop.eup %3350  ;;  %v5437_v9 = vld [vmem:[#allocation53_spill] sm:$0xff] }
 0x3ea   : > { %1897 = vperm.xlu1 %3136, %v3323_v20   ;;  %v1754_v20 = vmul.f32 1.442695, %v1631_v56  ;;  %v1625_v34 = vsub.f32 %v5437_v9, %v4798_v45 }
 0x3eb   : > { %1936 = vperm.xlu0 %3137, %v3325_v40   ;;  %v5431_v40 = vld [vmem:[#allocation49_spill] sm:$0xff] }
 0x3ec   : > { %v1618_v35 = vsub.f32 %v5431_v40, %v4791_v6  ;;  %3360 = vpow2.f32 %v1754_v20  ;;  %v1742_v50 = vmul.f32 1.442695, %v1625_v34  ;;  %v1633_v40 = vsub.f32 %v4650_v52, %v4814_v57 }
 0x3ed   : > { %3362 = vpow2.f32 %v1722_v54 }
 0x3ee   : > { %1903 = vperm.xlu1 %3136, %v3327_v11   ;;  %v1728_v11 = vmul.f32 1.442695, %v1618_v35  ;;  %v3353_v48 = vpop.eup %3352 }
 0x3ef   : > { %1954 = vperm.xlu0 %3137, %v3329_v16   ;;  %v1632_v16 = vsub.f32 %v4625_v47, %v4814_v57  ;;  %v1710_v47 = vmul.f32 1.442695, %v1609_v7 }
 0x3f0   : > { %3364 = vpow2.f32 %v1728_v11 }
 0x3f1   : > { %v1756_v31 = vmul.f32 1.442695, %v1632_v16  ;;  %3366 = vpow2.f32 %v1748_v29  ;;  %v3396_v16 = vld [vmem:[%s3825_s7 + $0x8] sm:$0xff]  ;;  %v5439_v29 = vld [vmem:[#allocation26_spill] sm:$0xff] }
 0x3f2   : > { %1909 = vperm.xlu1 %3136, %v3331_v62   ;;  %v1626_v62 = vsub.f32 %v4599_v27, %v4798_v45  ;;  %v1738_v27 = vmul.f32 1.442695, %v1623_v33 }
 0x3f3   : > { %1975 = vperm.xlu0 %3137, %v3333_v1   ;;  %v3355_v1 = vpop.eup %3354  ;;  %3368 = vpow2.f32 %v1756_v31 }
 0x3f4   : > { %v3357_v8 = vpop.eup %3356  ;;  %v1744_v37 = vmul.f32 1.442695, %v1626_v62  ;;  %3370 = vpow2.f32 %v1710_v47 }
 0x3f5   : > { %v3359_v15 = vpop.eup %3358 }
 0x3f6   : > { %1915 = vperm.xlu1 %3136, %v3335_v5   ;;  %v3361_v5 = vpop.eup %3360  ;;  %3372 = vpow2.f32 %v1744_v37 }
 0x3f7   : > { %1939 = vperm.xlu0 %3137, %v3337_v12   ;;  %v5435_v12 = vld [vmem:[#allocation44_spill] sm:$0xff]  ;;  %v3363_v14 = vpop.eup %3362  ;;  %3374 = vpow2.f32 %v1738_v27 }
 0x3f8   : > { %v1610_v63 = vsub.f32 %v5435_v12, %v4778_v10  ;;  %3376 = vpow2.f32 %v1746_v44  ;;  %v1730_v10 = vmul.f32 1.442695, %v1619_v60 }
 0x3fa   : > { %1921 = vperm.xlu1 %3136, %v3339_v19   ;;  %v3365_v43 = vpop.eup %3364  ;;  %v1712_v3 = vmul.f32 1.442695, %v1610_v63  ;;  %v1624_v19 = vsub.f32 %v5436_v36, %v4798_v45  ;;  %v3399_v63 = vld [vmem:[%s3825_s7 + $0x18] sm:$0xff] }
 0x3fb   : > { %1981 = vperm.xlu0 %3137, %v3341_v13   ;;  %v1762_v13 = vmul.f32 1.442695, %v1635_v42  ;;  %v3367_v46 = vpop.eup %3366 }
 0x3fc   : > { %3378 = vpow2.f32 %v1712_v3  ;;  %v1740_v18 = vmul.f32 1.442695, %v1624_v19  ;;  %v3400_v19 = vld [vmem:[%s3825_s7 + $0x20] sm:$0xff] }
 0x3fd   : > { %v3369_v25 = vpop.eup %3368  ;;  %3380 = vpow2.f32 %v1762_v13 }
 0x3fe   : > { %1927 = vperm.xlu1 %3136, %v3343_v24   ;;  %v3371_v56 = vpop.eup %3370  ;;  %3382 = vpow2.f32 %v1740_v18 }
 0x3ff   : > { %2002 = vperm.xlu0 %3137, %v3345_v21   ;;  %v1714_v21 = vmul.f32 1.442695, %v1611_v30  ;;  %3384 = vpow2.f32 %v1526_v4 }
 0x400   : > { %v3373_v24 = vpop.eup %3372 }
 0x401   : > { %v3375_v38 = vpop.eup %3374  ;;  %3386 = vpow2.f32 %v1714_v21 }
 0x402   : > { %1933 = vperm.xlu1 %3136, %v3347_v58   ;;  %v3377_v20 = vpop.eup %3376  ;;  %3388 = vpow2.f32 %v1742_v50  ;;  %v1758_v58 = vmul.f32 1.442695, %v1633_v40  ;;  %v3402_v50 = vld [vmem:[%s3825_s7 + $0x30] sm:$0xff] }
 0x403   : > { %1963 = vperm.xlu0 %3137, %v3349_v23   ;;  %3390 = vpow2.f32 %v1730_v10  ;;  %v1760_v23 = vmul.f32 1.442695, %v1634_v51 }
 0x404   : > { %3392 = vpow2.f32 %v1758_v58  ;;  %v3403_v58 = vld [vmem:[%s3825_s7 + $0x38] sm:$0xff] }
 0x405   : > { %3394 = vpow2.f32 %v1760_v23 }
 0x406   : > { %1951 = vperm.xlu1 %3136, %v3351_v39   ;;  %v3379_v0 = vpop.eup %3378 }
 0x407   : > { %2005 = vperm.xlu0 %3137, %v3353_v48   ;;  %v3381_v17 = vpop.eup %3380 }
 0x408   : > { %v3383_v45 = vpop.eup %3382 }
 0x409   : > { %v4871_v35 = vpop.eup %3384 }
 0x40a   : > { %1957 = vperm.xlu1 %3136, %v3355_v1  }
 0x40b   : > { %1966 = vperm.xlu0 %3137, %v3357_v8   ;;  %v3387_v6 = vpop.eup %3386  ;;  %v5440_v8 = vld [vmem:[#allocation27_spill] sm:$0xff] }
 0x40c   : > { %v3389_v54 = vpop.eup %3388 }
 0x40d   : > { %v3391_v52 = vpop.eup %3390 }
 0x40e   : > { %1978 = vperm.xlu1 %3136, %v3359_v15   ;;  %v3393_v7 = vpop.eup %3392 }
 0x40f   : > { %2008 = vperm.xlu0 %3137, %v3361_v5   ;;  %v3395_v5 = vpop.eup %3394 }
 0x412   : > { %1960 = vperm.xlu1 %3136, %v3363_v14  }
 0x413   : > { %1969 = vperm.xlu0 %3137, %v3365_v43  }
 0x416   : > { %1999 = vperm.xlu1 %3136, %v3367_v46  }
 0x417   : > { %2011 = vperm.xlu0 %3137, %v3369_v25  }
 0x41a   : > { %1942 = vperm.xlu1 %3136, %v3371_v56   ;;  %v3401_v56 = vld [vmem:[%s3825_s7 + $0x28] sm:$0xff] }
 0x41b   : > { %1993 = vperm.xlu0 %3137, %v3373_v24  }
 0x41e   : > { %1984 = vperm.xlu1 %3136, %v3375_v38  }
 0x41f   : > { %1996 = vperm.xlu0 %3137, %v3377_v20  }
 0x422   : > { %1945 = vperm.xlu1 %3136, %v3379_v0  }
 0x423   : > { %2020 = vperm.xlu0 %3137, %v3381_v17  }
 0x426   : > { %1987 = vperm.xlu1 %3136, %v3383_v45  }
 0x427   : > { %2351 = vperm.xlu0 %3137, %v4871_v35  }
 0x42a   : > { %1948 = vperm.xlu1 %3136, %v3387_v6  }
 0x42e   : > { %1990 = vperm.xlu1 %3136, %v3389_v54  }
 0x431   : > { %v1835_v2 = vpop.permute.xlu1 %1834 }
 0x432   : > { %v2029_v11 = vrot.slane %v1835_v2, %v5438_v22  ;;  %v2420_v39 = vmul.f32 %v3396_v16, %v1835_v2  ;;  %v1832_v48 = vpop.permute.xlu0 %1831  ;;  %1972 = vperm.xlu1 %3136, %v3391_v52  }
 0x433   : > { %v2025_v59 = vrot.slane %v1832_v48, %v5439_v29  ;;  %v2419_v57 = vmul.f32 %v3397_v32, %v1832_v48  ;;  %v3405_v48 = vld [vmem:[%s3825_s7 + $0x40] sm:$0xff] }
 0x435   : > { %v2030_v31 = vsel %vm1188_vm1, %v2029_v11, %v2025_v59  ;;  %v2483_v62 = vadd.f32 %v2420_v39, %v2419_v57  ;;  %v1838_v1 = vpop.permute.xlu1 %1837  ;;  %v3404_v11 = vld [vmem:[%s3825_s7 + $0x48] sm:$0xff] }
 0x436   : > { %v2034_v47 = vrot.slane %v1838_v1, %v5440_v8  ;;  %v2421_v33 = vmul.f32 %v3398_v41, %v1838_v1  ;;  %v1859_v37 = vpop.permute.xlu0 %1858  ;;  %2014 = vperm.xlu1 %3136, %v3393_v7   ;;  %v3406_v1 = vld [vmem:[%s3825_s7 + $0x50] sm:$0xff] }
 0x437   : > { %v2068_v2 = vrot.slane %v1859_v37, %v5438_v22  ;;  %v2428_v16 = vmul.f32 %v3404_v11, %v1859_v37  ;;  %v3407_v37 = vld [vmem:[%s3825_s7 + $0x58] sm:$0xff] }
 0x438   : > { %v2035_v55 = vsel %vm1195_vm2, %v2034_v47, %v2030_v31  ;;  %v2484_v15 = vadd.f32 %v2483_v62, %v2421_v33 }
 0x439   : > { %v1841_v27 = vpop.permute.xlu1 %1840 }
 0x43a   : > { %v2039_v12 = vrot.slane %v1841_v27, %v4249_v49  ;;  %v2422_v44 = vmul.f32 %v3399_v63, %v1841_v27  ;;  %v1865_v42 = vpop.permute.xlu0 %1864  ;;  %2017 = vperm.xlu1 %3136, %v3395_v5  }
 0x43b   : > { %v2078_v33 = vrot.slane %v1865_v42, %v4249_v49 }
 0x43c   : > { %v2040_v14 = vsel %vm1202_vm3, %v2039_v12, %v2035_v55  ;;  %v2485_v43 = vadd.f32 %v2484_v15, %v2422_v44  ;;  %v2430_v55 = vmul.f32 %v3407_v37, %v1865_v42 }
 0x43d   : > { %v1844_v3 = vpop.permute.xlu1 %1843 }
 0x43e   : > { %v2044_v36 = vrot.slane %v1844_v3, %v4279_v28  ;;  %v2423_v13 = vmul.f32 %v3400_v19, %v1844_v3  ;;  %v1871_v46 = vpop.permute.xlu0 %1870 }
 0x43f   : > { %v2088_v19 = vrot.slane %v1871_v46, %v4293_v26 }
 0x440   : > { %v2045_v25 = vsel %vm1209_vm4, %v2044_v36, %v2040_v14  ;;  %v2486_v18 = vadd.f32 %v2485_v43, %v2423_v13  ;;  %v3408_v14 = vld [vmem:[%s3825_s7 + $0x60] sm:$0xff]  ;;  %v3409_v13 = vld [vmem:[%s3825_s7 + $0x68] sm:$0xff] }
 0x441   : > { %v1847_v30 = vpop.permute.xlu1 %1846  ;;  %v2432_v42 = vmul.f32 %v3409_v13, %v1871_v46  ;;  %v3411_v46 = vld [vmem:[%s3825_s7 + $0x78] sm:$0xff] }
 0x442   : > { %v2049_v4 = vrot.slane %v1847_v30, %v4293_v26  ;;  %v2424_v24 = vmul.f32 %v3401_v56, %v1847_v30  ;;  %v4892_v21 = vpop.permute.xlu0 %1876 }
 0x444   : > { %v2050_v9 = vsel %vm1216_vm5, %v2049_v4, %v2045_v25  ;;  %v2487_v34 = vadd.f32 %v2486_v18, %v2424_v24 }
 0x445   : > { %v1850_v38 = vpop.permute.xlu1 %1849 }
 0x446   : > { %v2054_v20 = vrot.slane %v1850_v38, %v4310_v61  ;;  %v2425_v60 = vmul.f32 %v3402_v50, %v1850_v38  ;;  %v4897_v0 = vpop.permute.xlu0 %1882  ;;  %v2098_v50 = vrot.slane %v4892_v21, %v4304_v53 }
 0x448   : > { %v2055_v17 = vsel %vm1223_vm6, %v2054_v20, %v2050_v9  ;;  %v2488_v10 = vadd.f32 %v2487_v34, %v2425_v60  ;;  %v3410_v9 = vld [vmem:[%s3825_s7 + $0x70] sm:$0xff]  ;;  %v2434_v60 = vmul.f32 %v3411_v46, %v4892_v21 }
 0x449   : > { %v1853_v40 = vpop.permute.xlu1 %1852 }
 0x44a   : > { %v2059_v45 = vrot.slane %v1853_v40, %v4304_v53  ;;  %v2426_v51 = vmul.f32 %v3403_v58, %v1853_v40  ;;  %v4902_v6 = vpop.permute.xlu0 %1888  ;;  %v2107_v40 = vrot.slane %v4897_v0, %v5438_v22 }
 0x44b   : > { %v2117_v37 = vrot.slane %v4902_v6, %v4249_v49 }
 0x44c   : > { %v2060_v23 = vsel %vm1230_vm7, %v2059_v45, %v2055_v17  ;;  %v2489_v54 = vadd.f32 %v2488_v10, %v2426_v51  ;;  %v3412_v45 = vld [vmem:[%s3825_s7 + $0x88] sm:$0xff] }
 0x44d   : > { %v1856_v52 = vpop.permute.xlu1 %1855  ;;  %v2436_v58 = vmul.f32 %v3412_v45, %v4897_v0 }
 0x44e   : > { %v2064_v39 = vrot.slane %v1856_v52, %v5439_v29  ;;  %v2427_v59 = vmul.f32 %v3405_v48, %v1856_v52  ;;  %v4909_v32 = vpop.permute.xlu0 %1894  ;;  %v2490_v27 = vrot.slane %v2489_v54, 4 }
 0x450   : > { %v2069_v57 = vsel %vm1188_vm1, %v2068_v2, %v2064_v39  ;;  %v2496_v7 = vadd.f32 %v2428_v16, %v2427_v59  ;;  %v2491_v30 = vadd.f32 %v2490_v27, %v2489_v54  ;;  %v3413_v16 = vld [vmem:[%s3825_s7 + $0x80] sm:$0xff] }
 0x451   : > { %v1862_v31 = vpop.permute.xlu1 %1861 }
 0x452   : > { %v2073_v62 = vrot.slane %v1862_v31, %v5440_v8  ;;  %v2429_v47 = vmul.f32 %v3406_v1, %v1862_v31  ;;  %v4914_v41 = vpop.permute.xlu0 %1900  ;;  %v2492_v51 = vrot.slane %v2491_v30, 2 }
 0x453   : > { %v2137_v45 = vrot.slane %v4914_v41, %v4304_v53 }
 0x454   : > { %v2074_v15 = vsel %vm1195_vm2, %v2073_v62, %v2069_v57  ;;  %v2497_v5 = vadd.f32 %v2496_v7, %v2429_v47  ;;  %v2493_v0 = vadd.f32 %v2492_v51, %v2491_v30  ;;  %v3414_v47 = vld [vmem:[%s3825_s7 + $0x90] sm:$0xff] }
 0x455   : > { %v1868_v12 = vpop.permute.xlu1 %1867  ;;  %v2079_v63 = vsel %vm1202_vm3, %v2078_v33, %v2074_v15 }
 0x456   : > { %v2083_v44 = vrot.slane %v1868_v12, %v4279_v28  ;;  %v2431_v43 = vmul.f32 %v3408_v14, %v1868_v12  ;;  %v2498_v3 = vadd.f32 %v2497_v5, %v2430_v55  ;;  %v4922_v36 = vpop.permute.xlu0 %1906  ;;  %v3415_v55 = vld [vmem:[%s3825_s7 + $0x98] sm:$0xff] }
 0x457   : > { %v2438_v15 = vmul.f32 %v3415_v55, %v4902_v6  ;;  %v2127_v6 = vrot.slane %v4909_v32, %v4293_v26 }
 0x458   : > { %v2084_v25 = vsel %vm1209_vm4, %v2083_v44, %v2079_v63  ;;  %v2499_v18 = vadd.f32 %v2498_v3, %v2431_v43  ;;  %v2494_v63 = vrot.slane %v2493_v0, 1 }
 0x459   : > { %v1874_v4 = vpop.permute.xlu1 %1873  ;;  %v2089_v56 = vsel %vm1216_vm5, %v2088_v19, %v2084_v25  ;;  %v3416_v19 = vld [vmem:[%s3825_s7 + $0xa0] sm:$0xff] }
 0x45a   : > { %v2093_v24 = vrot.slane %v1874_v4, %v4310_v61  ;;  %v2433_v34 = vmul.f32 %v3410_v9, %v1874_v4  ;;  %v2500_v38 = vadd.f32 %v2499_v18, %v2432_v42  ;;  %v4930_v20 = vpop.permute.xlu0 %1912  ;;  %v3417_v18 = vld [vmem:[%s3825_s7 + $0xa8] sm:$0xff]  ;;  %v2495_v9 = vadd.f32 %v2494_v63, %v2493_v0 }
 0x45b   : > { %v2440_v30 = vmul.f32 %v3417_v18, %v4909_v32  ;;  %v3419_v32 = vld [vmem:[%s3825_s7 + $0xb8] sm:$0xff] }
 0x45c   : > { %v2094_v17 = vsel %vm1223_vm6, %v2093_v24, %v2089_v56  ;;  %v2501_v10 = vadd.f32 %v2500_v38, %v2433_v34 }
 0x45d   : > { %v2099_v54 = vsel %vm1230_vm7, %v2098_v50, %v2094_v17  ;;  %v1880_v52 = vpop.permute.xlu1 %1879 }
 0x45e   : > { %v2334_v2 = vsel %vm1505_vm8, %v2099_v54, %v2060_v23  ;;  %v2502_v11 = vadd.f32 %v2501_v10, %v2434_v60  ;;  %v2103_v21 = vrot.slane %v1880_v52, %v5439_v29  ;;  %v2435_v39 = vmul.f32 %v3413_v16, %v1880_v52  ;;  %v4945_v48 = vpop.permute.xlu0 %1918  ;;  %v3418_v60 = vld [vmem:[%s3825_s7 + $0xb0] sm:$0xff] }
 0x45f   : > { %v2146_v16 = vrot.slane %v4922_v36, %v5438_v22 }
 0x460   : > { %v2503_v59 = vrot.slane %v2502_v11, 4  ;;  %v2108_v57 = vsel %vm1188_vm1, %v2107_v40, %v2103_v21  ;;  %v2509_v7 = vadd.f32 %v2436_v58, %v2435_v39  ;;  %v2442_v58 = vmul.f32 %v3419_v32, %v4914_v41 }
 0x461   : > { %v1886_v31 = vpop.permute.xlu1 %1885 }
 0x462   : > { %v2504_v62 = vadd.f32 %v2503_v59, %v2502_v11  ;;  %v2112_v1 = vrot.slane %v1886_v31, %v5440_v8  ;;  %v2437_v23 = vmul.f32 %v3414_v47, %v1886_v31  ;;  %v4950_v33 = vpop.permute.xlu0 %1924 }
 0x464   : > { %v2505_v5 = vrot.slane %v2504_v62, 2  ;;  %v2113_v27 = vsel %vm1195_vm2, %v2112_v1, %v2108_v57  ;;  %v2510_v12 = vadd.f32 %v2509_v7, %v2437_v23  ;;  %v2156_v23 = vrot.slane %v4930_v20, %v4249_v49 }
 0x465   : > { %v1892_v44 = vpop.permute.xlu1 %1891  ;;  %v2118_v14 = vsel %vm1202_vm3, %v2117_v37, %v2113_v27 }
 0x466   : > { %v2506_v43 = vadd.f32 %v2505_v5, %v2504_v62  ;;  %v2122_v3 = vrot.slane %v1892_v44, %v4279_v28  ;;  %v2439_v13 = vmul.f32 %v3416_v19, %v1892_v44  ;;  %v2511_v42 = vadd.f32 %v2510_v12, %v2438_v15  ;;  %v4960_v25 = vpop.permute.xlu0 %1930 }
 0x468   : > { %v2507_v4 = vrot.slane %v2506_v43, 1  ;;  %v2123_v56 = vsel %vm1209_vm4, %v2122_v3, %v2118_v14  ;;  %v2512_v24 = vadd.f32 %v2511_v42, %v2439_v13  ;;  %v2166_v14 = vrot.slane %v4945_v48, %v4293_v26 }
 0x469   : > { %v1898_v34 = vpop.permute.xlu1 %1897  ;;  %v2128_v38 = vsel %vm1216_vm5, %v2127_v6, %v2123_v56  ;;  %v2176_v42 = vrot.slane %v4950_v33, %v4304_v53 }
 0x46a   : > { %v2508_v50 = vadd.f32 %v2507_v4, %v2506_v43  ;;  %v2132_v46 = vrot.slane %v1898_v34, %v4310_v61  ;;  %v2441_v17 = vmul.f32 %v3418_v60, %v1898_v34  ;;  %v2513_v10 = vadd.f32 %v2512_v24, %v2440_v30  ;;  %v4970_v40 = vpop.permute.xlu0 %1936  ;;  %v3420_v4 = vld [vmem:[%s3825_s7 + $0xc0] sm:$0xff]  ;;  %v3422_v60 = vld [vmem:[%s3825_s7 + $0xd0] sm:$0xff] }
 0x46c   : > { %v2595_v51 = vsel %vm1505_vm8, %v2508_v50, %v2495_v9  ;;  %v2133_v54 = vsel %vm1223_vm6, %v2132_v46, %v2128_v38  ;;  %v2514_v52 = vadd.f32 %v2513_v10, %v2441_v17  ;;  %v3421_v50 = vld [vmem:[%s3825_s7 + $0xc8] sm:$0xff] }
 0x46d   : > { %v2138_v11 = vsel %vm1230_vm7, %v2137_v45, %v2133_v54  ;;  %v1904_v21 = vpop.permute.xlu1 %1903  ;;  %v2444_v46 = vmul.f32 %v3421_v50, %v4922_v36 }
 0x46e   : > { %v2335_v39 = vsel %vm1507_vm9, %v2138_v11, %v2334_v2  ;;  %v2515_v59 = vadd.f32 %v2514_v52, %v2442_v58  ;;  %v2142_v57 = vrot.slane %v1904_v21, %v5439_v29  ;;  %v4983_v7 = vpop.permute.xlu0 %1954  ;;  %v2443_v56 = vmul.f32 %v3420_v4, %v1904_v21  ;;  %v3424_v11 = vld [vmem:[%s3825_s7 + $0xe0] sm:$0xff] }
 0x470   : > { %v2516_v0 = vrot.slane %v2515_v59, 4  ;;  %v2147_v41 = vsel %vm1188_vm1, %v2146_v16, %v2142_v57  ;;  %v2522_v10 = vadd.f32 %v2444_v46, %v2443_v56  ;;  %v3425_v57 = vld [vmem:[%s3825_s7 + $0xe8] sm:$0xff]  ;;  %v2185_v56 = vrot.slane %v4960_v25, %v5438_v22  ;;  %v3433_v46 = vld [vmem:[%s3825_s7 + $0x150] sm:$0xff] }
 0x471   : > { %v1910_v31 = vpop.permute.xlu1 %1909 }
 0x472   : > { %v2517_v62 = vadd.f32 %v2516_v0, %v2515_v59  ;;  %v2151_v1 = vrot.slane %v1910_v31, %v5440_v8  ;;  %v4987_v47 = vpop.permute.xlu0 %1975  ;;  %v2445_v17 = vmul.f32 %v3422_v60, %v1910_v31  ;;  %v2448_v0 = vmul.f32 %v3425_v57, %v4945_v48  ;;  %v3426_v31 = vld [vmem:[%s3825_s7 + $0xf0] sm:$0xff] }
 0x474   : > { %v2518_v37 = vrot.slane %v2517_v62, 2  ;;  %v2152_v2 = vsel %vm1195_vm2, %v2151_v1, %v2147_v41  ;;  %v2523_v32 = vadd.f32 %v2522_v10, %v2445_v17  ;;  %v2195_v10 = vrot.slane %v4970_v40, %v4249_v49 }
 0x475   : > { %v1916_v55 = vpop.permute.xlu1 %1915  ;;  %v2157_v15 = vsel %vm1202_vm3, %v2156_v23, %v2152_v2  ;;  %v3427_v2 = vld [vmem:[%s3825_s7 + $0xf8] sm:$0xff] }
 0x476   : > { %v2519_v5 = vadd.f32 %v2518_v37, %v2517_v62  ;;  %v2161_v27 = vrot.slane %v1916_v55, %v4279_v28  ;;  %v4994_v12 = vpop.permute.xlu0 %1939  ;;  %v2447_v21 = vmul.f32 %v3424_v11, %v1916_v55  ;;  %v2450_v55 = vmul.f32 %v3427_v2, %v4950_v33 }
 0x478   : > { %v2520_v63 = vrot.slane %v2519_v5, 1  ;;  %v2162_v44 = vsel %vm1209_vm4, %v2161_v27, %v2157_v15  ;;  %v3428_v27 = vld [vmem:[%s3825_s7 + $0x100] sm:$0xff] }
 0x479   : > { %v1922_v43 = vpop.permute.xlu1 %1921  ;;  %v2167_v6 = vsel %vm1216_vm5, %v2166_v14, %v2162_v44  ;;  %v3429_v14 = vld [vmem:[%s3825_s7 + $0x108] sm:$0xff] }
 0x47a   : > { %v2521_v3 = vadd.f32 %v2520_v63, %v2519_v5  ;;  %v2171_v19 = vrot.slane %v1922_v43, %v4310_v61  ;;  %v5000_v13 = vpop.permute.xlu0 %1981 }
 0x47c   : > { %v5006_v18 = vsel %vm1507_vm9, %v2521_v3, %v2595_v51  ;;  %v2172_v30 = vsel %vm1223_vm6, %v2171_v19, %v2167_v6  ;;  %v3423_v51 = vld [vmem:[%s3825_s7 + $0xd8] sm:$0xff]  ;;  %v3430_v3 = vld [vmem:[%s3825_s7 + $0x110] sm:$0xff] }
 0x47d   : > { %v2177_v24 = vsel %vm1230_vm7, %v2176_v42, %v2172_v30  ;;  %v5011_v9 = vpop.permute.xlu1 %1927  ;;  %v2446_v54 = vmul.f32 %v3423_v51, %v4930_v20  ;;  %v2449_v20 = vmul.f32 %v3426_v31, %v1922_v43  ;;  %v2452_v43 = vmul.f32 %v3429_v14, %v4960_v25  ;;  %v3431_v42 = vld [vmem:[%s3825_s7 + $0x140] sm:$0xff] }
 0x47e   : > { %v5013_v34 = vpop.permute.xlu0 %2002  ;;  %v5016_v38 = vsel %vm1509_vm10, %v2177_v24, %v2335_v39  ;;  %v2451_v63 = vmul.f32 %v3428_v27, %v5011_v9  ;;  %v3432_v24 = vld [vmem:[%s3825_s7 + $0x148] sm:$0xff]  ;;  %v3436_v31 = vld [vmem:[%s3825_s7 + $0x180] sm:$0xff]  ;;  %v2268_v27 = vrot.slane %v5000_v13, %v5440_v8 }
 0x47f   : > { %v2524_v16 = vadd.f32 %v2523_v32, %v2446_v54  ;;  %v2460_v50 = vmul.f32 %v3432_v24, %v4983_v7  ;;  %v3434_v32 = vld [vmem:[%s3825_s7 + $0x118] sm:$0xff]  ;;  %v2224_v54 = vrot.slane %v4983_v7, %v5438_v22  ;;  %v3440_v24 = vld [vmem:[%s3825_s7 + $0x128] sm:$0xff] }
 0x480   : > { %v2535_v30 = vadd.f32 %v2452_v43, %v2451_v63  ;;  %v2454_v51 = vmul.f32 %v3434_v32, %v4970_v40  ;;  %v3438_v63 = vld [vmem:[%s3825_s7 + $0x188] sm:$0xff]  ;;  %v3442_v32 = vld [vmem:[%s3825_s7 + $0x160] sm:$0xff] }
 0x481   : > { %v5021_v45 = vpop.permute.xlu1 %1933  ;;  %v2525_v59 = vadd.f32 %v2524_v16, %v2447_v21  ;;  %v2181_v21 = vrot.slane %v5011_v9, %v5439_v29  ;;  %v2200_v9 = vrot.slane %v4994_v12, %v4279_v28 }
 0x482   : > { %v5023_v58 = vpop.permute.xlu0 %1963  ;;  %v2453_v19 = vmul.f32 %v3430_v3, %v5021_v45  ;;  %v2190_v40 = vrot.slane %v5021_v45, %v5440_v8 }
 0x483   : > { %v2526_v62 = vadd.f32 %v2525_v59, %v2448_v0  ;;  %v3435_v59 = vld [vmem:[%s3825_s7 + $0x158] sm:$0xff]  ;;  %v2259_v0 = vrot.slane %v4987_v47, %v5439_v29 }
 0x484   : > { %v2536_v25 = vadd.f32 %v2535_v30, %v2453_v19  ;;  %v2186_v19 = vsel %vm1188_vm1, %v2185_v56, %v2181_v21  ;;  %v2463_v56 = vmul.f32 %v3442_v32, %v5023_v58 }
 0x485   : > { %v5027_v52 = vpop.permute.xlu1 %1951  ;;  %v2527_v37 = vadd.f32 %v2526_v62, %v2449_v20  ;;  %v2467_v20 = vmul.f32 %v3436_v31, %v4987_v47  ;;  %v3437_v62 = vld [vmem:[%s3825_s7 + $0x120] sm:$0xff] }
 0x486   : > { %v5032_v39 = vpop.permute.xlu0 %2005  ;;  %v2459_v6 = vmul.f32 %v3431_v42, %v5027_v52  ;;  %v2220_v7 = vrot.slane %v5027_v52, %v5439_v29  ;;  %v2537_v45 = vadd.f32 %v2536_v25, %v2454_v51  ;;  %v2302_v42 = vrot.slane %v5013_v34, %v5438_v22 }
 0x487   : > { %v2528_v5 = vadd.f32 %v2527_v37, %v2450_v55  ;;  %v2455_v37 = vmul.f32 %v3437_v62, %v4994_v12 }
 0x488   : > { %v2548_v16 = vadd.f32 %v2460_v50, %v2459_v6  ;;  %v2191_v6 = vsel %vm1195_vm2, %v2190_v40, %v2186_v19  ;;  %v2225_v30 = vsel %vm1188_vm1, %v2224_v54, %v2220_v7  ;;  %v3441_v50 = vld [vmem:[%s3825_s7 + $0x1c8] sm:$0xff] }
 0x489   : > { %v5030_v36 = vpop.permute.xlu1 %1957  ;;  %v2529_v33 = vrot.slane %v2528_v5, 4  ;;  %v2196_v31 = vsel %vm1202_vm3, %v2195_v10, %v2191_v6 }
 0x48a   : > { %v5039_v1 = vpop.permute.xlu0 %1966  ;;  %v2461_v60 = vmul.f32 %v3433_v46, %v5030_v36  ;;  %v2229_v2 = vrot.slane %v5030_v36, %v5440_v8  ;;  %v3439_v36 = vld [vmem:[%s3825_s7 + $0x190] sm:$0xff]  ;;  %v2476_v46 = vmul.f32 %v3441_v50, %v5013_v34 }
 0x48b   : > { %v2530_v11 = vadd.f32 %v2529_v33, %v2528_v5  ;;  %v2469_v3 = vmul.f32 %v3439_v36, %v5000_v13  ;;  %v2244_v10 = vrot.slane %v5039_v1, %v4293_v26  ;;  %v3447_v36 = vld [vmem:[%s3825_s7 + $0x1a0] sm:$0xff] }
 0x48c   : > { %v2549_v55 = vadd.f32 %v2548_v16, %v2461_v60  ;;  %v2239_v60 = vrot.slane %v5023_v58, %v4279_v28  ;;  %v2230_v51 = vsel %vm1195_vm2, %v2229_v2, %v2225_v30  ;;  %v2538_v16 = vadd.f32 %v2537_v45, %v2455_v37  ;;  %v3446_v45 = vld [vmem:[%s3825_s7 + $0x1c0] sm:$0xff]  ;;  %v3449_v30 = vld [vmem:[%s3825_s7 + $0x1d0] sm:$0xff] }
 0x48d   : > { %v5036_v41 = vpop.permute.xlu1 %1978  ;;  %v2531_v43 = vrot.slane %v2530_v11, 2 }
 0x48e   : > { %v5047_v48 = vpop.permute.xlu0 %2008  ;;  %v2468_v52 = vmul.f32 %v3438_v63, %v5036_v41  ;;  %v2263_v58 = vrot.slane %v5036_v41, %v5438_v22  ;;  %v3445_v22 = vld [vmem:[%s3825_s7 + $0x168] sm:$0xff] }
 0x48f   : > { %v2464_v41 = vmul.f32 %v3445_v22, %v5039_v1  ;;  %v2477_v1 = vmul.f32 %v3449_v30, %v5032_v39 }
 0x490   : > { %v2561_v21 = vadd.f32 %v2468_v52, %v2467_v20  ;;  %v2307_v20 = vrot.slane %v5032_v39, %v5440_v8 }
 0x491   : > { %v5041_v23 = vpop.permute.xlu1 %1960 }
 0x492   : > { %v5059_v4 = vpop.permute.xlu0 %1969  ;;  %v2462_v57 = vmul.f32 %v3435_v59, %v5041_v23  ;;  %v2234_v14 = vrot.slane %v5041_v23, %v4249_v49  ;;  %v3443_v59 = vld [vmem:[%s3825_s7 + $0x130] sm:$0xff] }
 0x493   : > { %v2249_v39 = vrot.slane %v5059_v4, %v4310_v61 }
 0x494   : > { %v2550_v33 = vadd.f32 %v2549_v55, %v2462_v57  ;;  %v2235_v54 = vsel %vm1202_vm3, %v2234_v14, %v2230_v51  ;;  %v5124_v57 = vadd.f32 %v2531_v43, %v2530_v11  ;;  %v3444_v11 = vld [vmem:[%s3825_s7 + $0x198] sm:$0xff]  ;;  %v2562_v14 = vadd.f32 %v2561_v21, %v2469_v3 }
 0x495   : > { %v5045_v15 = vpop.permute.xlu1 %1999  ;;  %v2240_v55 = vsel %vm1209_vm4, %v2239_v60, %v2235_v54  ;;  %v2201_v3 = vsel %vm1209_vm4, %v2200_v9, %v2196_v31  ;;  %v3451_v9 = vld [vmem:[%s3825_s7 + $0x1d8] sm:$0xff] }
 0x496   : > { %v5101_v12 = vpop.permute.xlu0 %2011  ;;  %v2551_v40 = vadd.f32 %v2550_v33, %v2463_v56  ;;  %v2298_v7 = vrot.slane %v5045_v15, %v5439_v29  ;;  %v2475_v63 = vmul.f32 %v3446_v45, %v5045_v15  ;;  %v3448_v33 = vld [vmem:[%s3825_s7 + $0x138] sm:$0xff]  ;;  %v2264_v15 = vsel %vm1188_vm1, %v2263_v58, %v2259_v0  ;;  %v3450_v29 = vld [vmem:[%s3825_s7 + $0x170] sm:$0xff]  ;;  %v3456_v45 = vld [vmem:[%s3825_s7 + $0x1e0] sm:$0xff] }
 0x497   : > { %v2312_v56 = vrot.slane %v5047_v48, %v4249_v49  ;;  %v2465_v47 = vmul.f32 %v3450_v29, %v5059_v4  ;;  %v2478_v21 = vmul.f32 %v3451_v9, %v5047_v48 }
 0x498   : > { %v2303_v50 = vsel %vm1188_vm1, %v2302_v42, %v2298_v7  ;;  %v2574_v0 = vadd.f32 %v2476_v46, %v2475_v63  ;;  %v2269_v42 = vsel %vm1195_vm2, %v2268_v27, %v2264_v15  ;;  %v3453_v46 = vld [vmem:[%s3825_s7 + $0x1b0] sm:$0xff]  ;;  %v2479_v63 = vmul.f32 %v3456_v45, %v5101_v12 }
 0x499   : > { %v5051_v44 = vpop.permute.xlu1 %1942  ;;  %v2308_v4 = vsel %vm1195_vm2, %v2307_v20, %v2303_v50 }
 0x49a   : > { %v2456_v23 = vmul.f32 %v3440_v24, %v5051_v44  ;;  %v5133_v37 = vpop.permute.xlu0 %1993  ;;  %v2552_v24 = vadd.f32 %v2551_v40, %v2464_v41  ;;  %v2205_v48 = vrot.slane %v5051_v44, %v4293_v26  ;;  %v2575_v7 = vadd.f32 %v2574_v0, %v2477_v1 }
 0x49b   : > { %v2473_v8 = vmul.f32 %v3453_v46, %v5133_v37  ;;  %v3459_v46 = vld [vmem:[%s3825_s7 + $0x1f0] sm:$0xff] }
 0x49c   : > { %v2539_v62 = vadd.f32 %v2538_v16, %v2456_v23  ;;  %v2245_v23 = vsel %vm1216_vm5, %v2244_v10, %v2240_v55  ;;  %v2553_v58 = vadd.f32 %v2552_v24, %v2465_v47  ;;  %v2317_v55 = vrot.slane %v5101_v12, %v4279_v28 }
 0x49d   : > { %v5067_v17 = vpop.permute.xlu1 %1984  ;;  %v2250_v31 = vsel %vm1223_vm6, %v2249_v39, %v2245_v23 }
 0x49e   : > { %v2470_v2 = vmul.f32 %v3444_v11, %v5067_v17  ;;  %v5171_v54 = vpop.permute.xlu0 %1996  ;;  %v2273_v13 = vrot.slane %v5067_v17, %v4249_v49  ;;  %v3455_v49 = vld [vmem:[%s3825_s7 + $0x178] sm:$0xff] }
 0x49f   : > { %v2293_v9 = vrot.slane %v5171_v54, %v4304_v53 }
 0x4a0   : > { %v2563_v60 = vadd.f32 %v2562_v14, %v2470_v2 }
 0x4a1   : > { %v5093_v5 = vpop.permute.xlu1 %1945 }
 0x4a2   : > { %v2457_v34 = vmul.f32 %v3443_v59, %v5093_v5  ;;  %v3452_v59 = vld [vmem:[%s3825_s7 + $0x1a8] sm:$0xff]  ;;  %v2210_v20 = vrot.slane %v5093_v5, %v4310_v61  ;;  %v2206_v5 = vsel %vm1216_vm5, %v2205_v48, %v2201_v3  ;;  %v2288_v3 = vrot.slane %v5133_v37, %v4310_v61  ;;  %v2021_v23 = vpop.permute.xlu0 %2020 }
 0x4a4   : > { %v2540_v43 = vadd.f32 %v2539_v62, %v2457_v34  ;;  %v3454_v62 = vld [vmem:[%s3825_s7 + $0x1b8] sm:$0xff] }
 0x4a5   : > { %v5119_v25 = vpop.permute.xlu1 %1987  ;;  %v2474_v11 = vmul.f32 %v3454_v62, %v5171_v54 }
 0x4a6   : > { %v2471_v19 = vmul.f32 %v3447_v36, %v5119_v25  ;;  %v2278_v2 = vrot.slane %v5119_v25, %v4279_v28  ;;  %v2274_v25 = vsel %vm1202_vm3, %v2273_v13, %v2269_v42 }
 0x4a8   : > { %v2564_v16 = vadd.f32 %v2563_v60, %v2471_v19  ;;  %v2313_v19 = vsel %vm1202_vm3, %v2312_v56, %v2308_v4  ;;  %v2279_v28 = vsel %vm1209_vm4, %v2278_v2, %v2274_v25 }
 0x4a9   : > { %v5144_v52 = vpop.permute.xlu1 %1948  ;;  %v2318_v39 = vsel %vm1209_vm4, %v2317_v55, %v2313_v19  ;;  %v2352_v19 = vpop.permute.xlu0 %2351 }
 0x4aa   : > { %v2458_v6 = vmul.f32 %v3448_v33, %v5144_v52  ;;  %v2215_v10 = vrot.slane %v5144_v52, %v4304_v53  ;;  %v2576_v33 = vadd.f32 %v2575_v7, %v2478_v21 }
 0x4ac   : > { %v2541_v32 = vadd.f32 %v2540_v43, %v2458_v6  ;;  %v2211_v6 = vsel %vm1223_vm6, %v2210_v20, %v2206_v5 }
 0x4ad   : > { %v1991_v51 = vpop.permute.xlu1 %1990  ;;  %v2216_v12 = vsel %vm1230_vm7, %v2215_v10, %v2211_v6 }
 0x4ae   : > { %v2472_v34 = vmul.f32 %v3452_v59, %v1991_v51  ;;  %v2542_v27 = vrot.slane %v2541_v32, 4  ;;  %v2283_v22 = vrot.slane %v1991_v51, %v4293_v26  ;;  %v2577_v51 = vadd.f32 %v2576_v33, %v2479_v63 }
 0x4af   : > { %v2337_v37 = vsel %vm1511_vm11, %v2216_v12, %v5016_v38 }
 0x4b0   : > { %v2565_v40 = vadd.f32 %v2564_v16, %v2472_v34  ;;  %v2543_v43 = vadd.f32 %v2542_v27, %v2541_v32  ;;  %v2284_v1 = vsel %vm1216_vm5, %v2283_v22, %v2279_v28  ;;  %v3457_v32 = vld [vmem:[%s3825_s7 + $0x1e8] sm:$0xff] }
 0x4b1   : > { %v1973_v44 = vpop.permute.xlu1 %1972  ;;  %v2289_v21 = vsel %vm1223_vm6, %v2288_v3, %v2284_v1 }
 0x4b2   : > { %v2566_v41 = vadd.f32 %v2565_v40, %v2473_v8  ;;  %v2466_v17 = vmul.f32 %v3455_v49, %v1973_v44  ;;  %v2254_v14 = vrot.slane %v1973_v44, %v4304_v53  ;;  %v2544_v29 = vrot.slane %v2543_v43, 2 }
 0x4b3   : > { %v2294_v27 = vsel %vm1230_vm7, %v2293_v9, %v2289_v21 }
 0x4b4   : > { %v2567_v52 = vadd.f32 %v2566_v41, %v2474_v11  ;;  %v2554_v36 = vadd.f32 %v2553_v58, %v2466_v17  ;;  %v2255_v50 = vsel %vm1230_vm7, %v2254_v14, %v2250_v31  ;;  %v3458_v31 = vld [vmem:[%s3825_s7 + $0x1f8] sm:$0xff]  ;;  %v2545_v8 = vadd.f32 %v2544_v29, %v2543_v43 }
 0x4b5   : > { %v2015_v30 = vpop.permute.xlu1 %2014  ;;  %v2338_v34 = vsel %vm1513_vm12, %v2255_v50, %v2337_v37  ;;  %v2482_v58 = vmul.f32 %v3458_v31, %v2021_v23  ;;  %v2533_v11 = vrot.slane %v5124_v57, 1  ;;  %v3630_v50 = vmov (!%p2748_p5), 0  }
 0x4b6   : > { %v2568_v15 = vrot.slane %v2567_v52, 4  ;;  %v2555_v24 = vrot.slane %v2554_v36, 4  ;;  %v2322_v60 = vrot.slane %v2015_v30, %v4293_v26  ;;  %v2480_v56 = vmul.f32 %v3457_v32, %v2015_v30  ;;  %3460 = vset.pattern.permute.xlu0 (!%p2748_p5), %v3630_v50 }
 0x4b7   : > { %v2332_v26 = vrot.slane %v2021_v23, %v4304_v53  ;;  %v2546_v44 = vrot.slane %v2545_v8, 1  ;;  %v2534_v49 = vadd.f32 %v2533_v11, %v5124_v57 }
 0x4b8   : > { %v2569_v47 = vadd.f32 %v2568_v15, %v2567_v52  ;;  %v2556_v0 = vadd.f32 %v2555_v24, %v2554_v36  ;;  %v2323_v4 = vsel %vm1216_vm5, %v2322_v60, %v2318_v39  ;;  %v2578_v48 = vadd.f32 %v2577_v51, %v2480_v56  ;;  %v2348_v36 = vld [vmem:[#allocation4] sm:$0xff]  ;;  %v1764_v15 = vld [vmem:[#allocation3] sm:$0xff] }
 0x4b9   : > { %v2018_v42 = vpop.permute.xlu1 %2017  ;;  %v2547_v55 = vadd.f32 %v2546_v44, %v2545_v8  ;;  %v2597_v14 = vsel %vm1509_vm10, %v2534_v49, %v5006_v18  ;;  %v2354_v30 = vmul.f32 %v2352_v19, %v2348_v36  ;;  %v1765_v18 = vmul.f32 %v4871_v35, %v1764_v15 }
 0x4ba   : > { %v2557_v16 = vrot.slane %v2556_v0, 2  ;;  %v2327_v59 = vrot.slane %v2018_v42, %v4310_v61  ;;  %v2481_v54 = vmul.f32 %v3459_v46, %v2018_v42  ;;  %v2570_v13 = vrot.slane %v2569_v47, 2 }
 0x4bb   : > { %v2339_v61 = vsel %vm1515_vm13, %v2294_v27, %v2338_v34  ;;  %v2598_v43 = vsel %vm1511_vm11, %v2547_v55, %v2597_v14 }
 0x4bc   : > { %v2328_v38 = vsel %vm1223_vm6, %v2327_v59, %v2323_v4  ;;  %v2558_v40 = vadd.f32 %v2557_v16, %v2556_v0  ;;  %v2579_v53 = vadd.f32 %v2578_v48, %v2481_v54  ;;  %v2571_v10 = vadd.f32 %v2570_v13, %v2569_v47 }
 0x4bd   : > { %v2333_v7 = vsel %vm1230_vm7, %v2332_v26, %v2328_v38 }
 0x4be   : > { %v2340_v62 = vsel %vm1517_vm14, %v2333_v7, %v2339_v61  ;;  %v2580_v20 = vadd.f32 %v2579_v53, %v2482_v58  ;;  %v2559_v22 = vrot.slane %v2558_v40, 1  ;;  %v2572_v45 = vrot.slane %v2571_v10, 1 }
 0x4bf   : > { %v2342_v2 = vsel %vm1520_vm15, %v2340_v62, 0.0 }
 0x4c0   : > { %2343 = vadd.xlane.f32.xlu1 %v2342_v2  ;;  %v2581_v41 = vrot.slane %v2580_v20, 4  ;;  %v2560_v63 = vadd.f32 %v2559_v22, %v2558_v40  ;;  %v2573_v52 = vadd.f32 %v2572_v45, %v2571_v10 }
 0x4c2   : > { %v2582_v17 = vadd.f32 %v2581_v41, %v2580_v20  ;;  %v2599_v33 = vsel %vm1513_vm12, %v2560_v63, %v2598_v43 }
 0x4c3   : > { %v2600_v57 = vsel %vm1515_vm13, %v2573_v52, %v2599_v33 }
 0x4c4   : > { %v2583_v5 = vrot.slane %v2582_v17, 2 }
 0x4c6   : > { %v2584_v25 = vadd.f32 %v2583_v5, %v2582_v17 }
 0x4c8   : > { %v2585_v6 = vrot.slane %v2584_v25, 1 }
 0x4ca   : > { %v2586_v28 = vadd.f32 %v2585_v6, %v2584_v25 }
 0x4cc   : > { %v2601_v12 = vsel %vm1517_vm14, %v2586_v28, %v2600_v57 }
 0x4cd   : > { %v2603_v1 = vadd.f32 %v2601_v12, %v2354_v30 }
 0x4cf   : > { %2604 = vst [vmem:[#allocation4] sm:$0xff] %v2603_v1 }
 0x4d6   : > { %v2610_v32 = vld [vmem:[#allocation4] sm:$0xff] (!%p2748_p5) }
 0x54a   : > { %2609 = sbr.rel (%p2748_p5) target bundleno = 1510 (0x5e6), region = 56 }
 0x54d   : > { %v2344_v24 = vpop.xlane.xlu1 %2343 }
 0x54e   : > { %v2345_v3 = vadd.f32 %v2344_v24, %v1765_v18 }
 0x550   : > { %2347 = vst.msk [vmem:[#allocation3] sm:$0xff] %vm2346_vm0, %v2345_v3 }
 0x557   : > { %v2611_v23 = vld [vmem:[#allocation3] sm:$0xff] }
 0x558   : > { %3461 = vrcp.f32 %v2611_v23 }
 0x562   : > { %v3462_v60 = vpop.eup %3461 }
 0x563   : > { %2616 = vperm.xlu0 %3460, %v3462_v60  }
 0x5e2   : > { %v2617_v56 = vpop.permute.xlu0 %2616 }
 0x5e3   : > { %v2619_v39 = vmul.f32 %v2617_v56, %v2610_v32 }
 0x5e5   : > { %2620 = vst [vmem:[%s300_s25] sm:$0xff] %v2619_v39 }
 0x5e6 PF: > { %s2750_s15 = sshll.u32 %s3605_s4, 7  ;;  %s2635_s22 = sshll.u32 %s300_s25, 4  ;;  %s2636_s22 = int_to_ptr.vmem [resolvable:$true] %s2635_s22 }
 0x5e7   : > { %s5244_s19 = scalar_lea.hbm %s5309_s5, %s2750_s15  ;;  %s2622_s10 = scalar_lea.sflag [#allocation8], %s298_s27 }
 0x5e8   : > { %s3491_s9 = scalar_lea.vmem %s2636_s22, 128  ;;  %p5441_p11 = scmp.ne.s32.totalorder %s5366_s17, 0 }
 0x5e9   : > { %p3492_p9 = scmp.ne.s32.totalorder %s2636_s22, %s3491_s9  ;;  %s3631_s8 = smov [#allocation11]  }
 0x5ea   : > { %s3495_s6 = sshll.u32 %s3631_s8, 4  ;;  %s3496_s6 = int_to_ptr.vmem [resolvable:$false] %s3495_s6 }
 0x5eb   : > { %p3493_p13 = pnand %p3492_p9, %p5441_p11  ;;  %s3497_s1 = scalar_lea.vmem %s3496_s6, 256 }
 0x5ec   : > { %p3498_p1 = scmp.lt.s32.totalorder %s2636_s22, %s3496_s6  ;;  %p3499_p2 = scmp.lt.s32.totalorder %s3497_s1, %s3491_s9 }
 0x5ed   : > { %p3494_p0 = pneg %p3493_p13 }
 0x5ee   : > { %p3500_p8 = por %p3499_p2, %p3498_p1 }
 0x5f0   : > { %p3501_p10 = pnand %p3500_p8, %p3494_p0 }
 0x5f2   : > { %3504 = shalt.err (!%p3501_p10)
}
 0x5f3   : > { %s3505_s4 = scalar_lea.hbm %s5244_s19, 128  ;;  %s3509_s27 = scalar_lea.hbm %s5309_s5, 256 }
 0x5f4   : > { %p3506_p3 = scmp.ne.s32.totalorder %s5244_s19, %s3505_s4  ;;  %p3510_p12 = scmp.lt.u32.totalorder %s5244_s19, %s5309_s5 }
 0x5f5   : > { %p3511_p4 = scmp.lt.u32.totalorder %s3509_s27, %s3505_s4  ;;  %p3513_p9 = scmp.lt.u32.totalorder %s3505_s4, %s5244_s19 }
 0x5f6   : > { %p3507_p6 = pnand %p3506_p3, %p5441_p11 }
 0x5f7   : > { %p3512_p5 = por %p3511_p4, %p3510_p12 }
 0x5f8   : > { %p3508_p7 = pneg %p3507_p6 }
 0x5f9   : > { %p3514_p13 = por %p3513_p9, %p3512_p5 }
 0x5fb   : > { %p3515_p0 = pnand %p3514_p13, %p3508_p7 }
 0x5fd   : > { %3518 = shalt.err (!%p3515_p0)
}
 0x5fe   : > { %3023 = dma.vmem_to_hbm [thread:$0]  (%p5441_p11), %s2636_s22, 128, %s5244_s19, %s2622_s10  }
 0x5ff PF: > { %p3035_p1 = scmp.ge.s32.totalorder %s3617_s29, 2  ;;  %s2647_s11 = sand.u32 1, %s3577_s20  }
 0x600   : > { %p5442_p2 = scmp.ne.s32.totalorder %s5369_s23, 0  ;;  %s2648_s12 = scalar_lea.sflag [#allocation8], %s2647_s11 }
 0x602   : > { %p3030_p8 = pnand %p3035_p1, %p5442_p2 }
 0x604   : > { %3572 = dma.done.wait (!%p3030_p8), %s2648_s12, 128  }
 0x605   : > { %3574 = vsyncadd (!%p3030_p8), %s2648_s12, 4294967168  ;;  %s23_s29 = sadd.s32 1, %s3617_s29   ;;  %s5443_s14 = sld [smem:[#allocation18_spill]] }
 0x606   : > { %p20_p10 = scmp.ge.s32.totalorder %s23_s29, 6   ;;  %s5444_s22 = sld [smem:[#allocation24_spill]] }
 0x607   : > { %s5445_s17 = sld [smem:[#allocation19_spill]]  ;;  %s5446_s25 = sld [smem:[#allocation25_spill]] }
 0x608   : > { %s5447_s26 = sld [smem:[#allocation20_spill]]  ;;  %s5448_s4 = sld [smem:[#allocation21_spill]] }
 0x609   : > { %s5449_s27 = sld [smem:[#allocation22_spill]]  ;;  %s5450_s28 = sld [smem:[#allocation23_spill]] }
 0x60a   : > { %s5451_s20 = smov %s3581_s21  ;;  %s5453_s23 = smov %s3593_s24 }
 0x60b   : > { %s5452_s21 = smov %s5443_s14  ;;  %22 = sbr.rel (!%p20_p10) target bundleno = 13 (0xd), region = 102 }
 0x60d   : > { %s5454_s24 = smov %s5445_s17 }
 0x612   :  { %2653 = vsyncpa [#allocation7], 1 }
 0x613   :  { %2655 = vsyncpa [#allocation7 + $0x1], 1 }
 0x614   :  { %2656 = vsyncpa [#allocation10], 1 }
 0x615   :  { %2657 = vsyncpa [#allocation8], 1 }
 0x616   :  { %2659 = vsyncpa [#allocation8 + $0x1], 1 }

</bundles_post_ra>
